<compile_context>
chip_gen: v7x
topology: tpu7x:2x2x1
jax: 0.10.0
libtpu: 0.0.40
codegen_flags: <defaults>
</compile_context>

<pallas_src>
import functools
import math

import jax
import jax.numpy as jnp
import numpy as np
from jax.experimental import pallas as pl
from jax.experimental.pallas import tpu as pltpu

# ---- model config (small, consistent with the module) ----
BATCH = 2
SEQ = 8
HIDDEN = 32
NUM_HEADS = 4
HEAD_DIM = HIDDEN // NUM_HEADS          # 8
INTERMEDIATE = 4 * HIDDEN               # 128
SCALE = 1.0 / math.sqrt(HEAD_DIM)
LN_EPS = 1e-12
_GELU_C = math.sqrt(2.0 / math.pi)


def _gelu_tanh(x):
    """tanh-approx GELU (|err| vs exact erf GELU < ~1e-3); tanh is an EUP op."""
    return 0.5 * x * (1.0 + jnp.tanh(_GELU_C * (x + 0.044715 * x * x * x)))


def _layer_norm(x, gamma, beta):
    mu = jnp.mean(x, axis=-1, keepdims=True)
    var = jnp.mean(jnp.square(x - mu), axis=-1, keepdims=True)
    return (x - mu) * jax.lax.rsqrt(var + LN_EPS) * gamma + beta


def _bert_layer_kernel(
    x_ref,       # (Bb, S, H) f32 hidden_states block
    mask_ref,    # (Bb, 1, 1, S) additive HF attention mask, f32
    wqkv_ref,    # (H, 3H)  [scaled Wq^T | Wk^T | Wv^T], compute dtype
    bqkv_ref,    # (1, 3H)  f32 (query part pre-scaled)
    wad_ref,     # (H, H)   attention-output dense, pre-transposed
    bad_ref,     # (1, H)
    ln1g_ref, ln1b_ref,   # (1, H)
    wi_ref,      # (H, I)   intermediate dense, pre-transposed
    bi_ref,      # (1, I)
    wo_ref,      # (I, H)   output dense, pre-transposed
    bo_ref,      # (1, H)
    ln2g_ref, ln2b_ref,   # (1, H)
    out_ref,     # (Bb, S, H) layer_output
    *probs_out,  # optionally: (Bb, NH, S, S) attention_probs
):
    Bb = x_ref.shape[0]
    cd = wqkv_ref.dtype                                # matmul operand dtype

    x = x_ref[...].reshape(Bb * SEQ, HIDDEN)           # (BS, H) f32 residual

    # ---- fused QKV: ONE lane-dense (BS, H) @ (H, 3H) matmul ----
    qkv = jnp.dot(x.astype(cd), wqkv_ref[...],
                  preferred_element_type=jnp.float32) + bqkv_ref[...]  # (BS,3H)
    qkv_c = qkv.astype(cd)

    # per-(batch, head) stacks (Bb*NH, S, D) via static row/lane slices
    def head_stack(col0):
        pieces = []
        for b in range(Bb):
            rows = qkv_c[b * SEQ:(b + 1) * SEQ]        # (S, 3H)
            for h in range(NUM_HEADS):
                c = col0 + h * HEAD_DIM
                pieces.append(rows[:, c:c + HEAD_DIM])  # (S, D)
        return jnp.stack(pieces, axis=0)                # (Bb*NH, S, D)

    q = head_stack(0)             # query columns carry the 1/sqrt(D) scale
    k = head_stack(HIDDEN)
    v = head_stack(2 * HIDDEN)

    # ---- attention scores, all (batch, head) pairs in one batched matmul ----
    scores = jnp.einsum("nqd,nkd->nqk", q, k,
                        preferred_element_type=jnp.float32)     # (Bb*NH, S, S)
    mvals = mask_ref[...]
    mask = jnp.concatenate(
        [jnp.broadcast_to(mvals[b, 0], (NUM_HEADS, 1, SEQ)) for b in range(Bb)],
        axis=0)                                                  # (Bb*NH, 1, S)
    scores = scores + mask

    # numerically-stable softmax; approximate reciprocal on the EUP
    m = jnp.max(scores, axis=-1, keepdims=True)
    e = jnp.exp(scores - m)
    probs = e * pl.reciprocal(jnp.sum(e, axis=-1, keepdims=True), approx=True)
    # TODO(synk): attention/hidden dropout and head_mask omitted
    # (eval mode; head_mask=None in the reference forward).

    if probs_out:                 # output_attentions=True (module hardcodes it)
        probs_out[0][...] = probs.reshape(
            Bb, NUM_HEADS, SEQ, SEQ).astype(probs_out[0].dtype)

    # ---- context, head lane-concat, ONE K=H attention-output dense ----
    ctx = jnp.einsum("nqk,nkd->nqd", probs.astype(cd), v,
                     preferred_element_type=jnp.float32)        # (Bb*NH, S, D)
    ctx_cat = jnp.concatenate(
        [jnp.concatenate([ctx[b * NUM_HEADS + h] for h in range(NUM_HEADS)],
                         axis=-1)
         for b in range(Bb)], axis=0)                           # (BS, H)

    attn_dense = jnp.dot(ctx_cat.astype(cd), wad_ref[...],
                         preferred_element_type=jnp.float32) + bad_ref[...]
    attn_out = _layer_norm(attn_dense + x, ln1g_ref[...], ln1b_ref[...])

    # ---- FFN: intermediate dense + tanh-GELU + output dense ----
    inter = jnp.dot(attn_out.astype(cd), wi_ref[...],
                    preferred_element_type=jnp.float32) + bi_ref[...]   # (BS,I)
    act = _gelu_tanh(inter)
    ffn = jnp.dot(act.astype(cd), wo_ref[...],
                  preferred_element_type=jnp.float32) + bo_ref[...]     # (BS,H)

    out = _layer_norm(ffn + attn_out, ln2g_ref[...], ln2b_ref[...])
    out_ref[...] = out.reshape(Bb, SEQ, HIDDEN).astype(out_ref.dtype)


def pack_params(p, compute_dtype=jnp.bfloat16):
    """One-time host-side packing: transposed weights, folded QK scale, 2-D biases."""
    H, I = HIDDEN, INTERMEDIATE
    cd = compute_dtype
    w_qkv = jnp.concatenate([SCALE * p["wq"].T, p["wk"].T, p["wv"].T], axis=1)
    b_qkv = jnp.concatenate([SCALE * p["bq"], p["bk"], p["bv"]]).reshape(1, 3 * H)
    return dict(
        w_qkv=w_qkv.astype(cd),
        b_qkv=b_qkv.astype(jnp.float32),
        w_ad=p["w_ad"].T.astype(cd),
        b_ad=p["b_ad"].reshape(1, H).astype(jnp.float32),
        ln1_g=p["ln1_g"].reshape(1, H).astype(jnp.float32),
        ln1_b=p["ln1_b"].reshape(1, H).astype(jnp.float32),
        w_i=p["w_i"].T.astype(cd),
        b_i=p["b_i"].reshape(1, I).astype(jnp.float32),
        w_o=p["w_o"].T.astype(cd),
        b_o=p["b_o"].reshape(1, H).astype(jnp.float32),
        ln2_g=p["ln2_g"].reshape(1, H).astype(jnp.float32),
        ln2_b=p["ln2_b"].reshape(1, H).astype(jnp.float32),
    )


def default_num_blocks(batch):
    """grid=(1,) on single-TC chips (v5e/v6e); split batch over v7x's 2 TCs."""
    try:
        kind = jax.devices()[0].device_kind.lower()
    except Exception:
        return 1
    if "v7" in kind or "7x" in kind:
        return max(1, min(batch, 2))
    return 1


@functools.partial(jax.jit, static_argnames=("output_attentions", "num_blocks"))
def bert_layer(hidden_states, attention_mask, packed, *,
               output_attentions=True, num_blocks=1):
    """Fused BertLayer forward. Returns (layer_output[, attention_probs])."""
    B, S, H = hidden_states.shape
    assert S == SEQ and H == HIDDEN and B % num_blocks == 0
    Bb = B // num_blocks

    def _full(shape):
        zeros = (0,) * len(shape)
        return pl.BlockSpec(shape, lambda i, _z=zeros: _z)

    in_specs = [
        pl.BlockSpec((Bb, S, H), lambda i: (i, 0, 0)),           # hidden_states
        pl.BlockSpec((Bb, 1, 1, S), lambda i: (i, 0, 0, 0)),     # attention_mask
        _full((H, 3 * H)), _full((1, 3 * H)),                    # w_qkv, b_qkv
        _full((H, H)), _full((1, H)),                            # w_ad, b_ad
        _full((1, H)), _full((1, H)),                            # ln1_g, ln1_b
        _full((H, INTERMEDIATE)), _full((1, INTERMEDIATE)),      # w_i, b_i
        _full((INTERMEDIATE, H)), _full((1, H)),                 # w_o, b_o
        _full((1, H)), _full((1, H)),                            # ln2_g, ln2_b
    ]

    out_shapes = [jax.ShapeDtypeStruct((B, S, H), jnp.float32)]
    out_specs = [pl.BlockSpec((Bb, S, H), lambda i: (i, 0, 0))]
    if output_attentions:
        out_shapes.append(jax.ShapeDtypeStruct((B, NUM_HEADS, S, S), jnp.float32))
        out_specs.append(pl.BlockSpec((Bb, NUM_HEADS, S, S),
                                      lambda i: (i, 0, 0, 0)))

    grid_spec = pltpu.PrefetchScalarGridSpec(
        num_scalar_prefetch=0,
        grid=(num_blocks,),
        in_specs=in_specs,
        out_specs=out_specs,
    )
    # TODO(synk): at real BERT dims (H>=768, I>=3072, S>=128) the whole-weight
    # in_specs must be re-tiled over INTERMEDIATE with an "arbitrary" reduction
    # grid axis + VMEM accumulator, and vmem_limit_bytes raised (v7x: 64 MiB).
    outs = pl.pallas_call(
        _bert_layer_kernel,
        out_shape=tuple(out_shapes),
        grid_spec=grid_spec,
        compiler_params=pltpu.CompilerParams(
            dimension_semantics=("parallel",)),
    )(
        hidden_states, attention_mask,
        packed["w_qkv"], packed["b_qkv"], packed["w_ad"], packed["b_ad"],
        packed["ln1_g"], packed["ln1_b"], packed["w_i"], packed["b_i"],
        packed["w_o"], packed["b_o"], packed["ln2_g"], packed["ln2_b"],
    )
    return tuple(outs)


def reference_bert_layer(x, mask, p):
    """Plain-JAX reference mirroring the PyTorch BertLayer forward exactly."""
    B, S, H = x.shape
    q = x @ p["wq"].T + p["bq"]
    k = x @ p["wk"].T + p["bk"]
    v = x @ p["wv"].T + p["bv"]

    def split(t):   # (B, S, H) -> (B, NH, S, D)
        return t.reshape(B, S, NUM_HEADS, HEAD_DIM).transpose(0, 2, 1, 3)

    q, k, v = split(q), split(k), split(v)
    scores = jnp.einsum("bhqd,bhkd->bhqk", q, k) / math.sqrt(HEAD_DIM)
    scores = scores + mask
    probs = jax.nn.softmax(scores, axis=-1)
    ctx = jnp.einsum("bhqk,bhkd->bhqd", probs, v)
    ctx = ctx.transpose(0, 2, 1, 3).reshape(B, S, H)

    def ln(t, g, b):
        mu = t.mean(-1, keepdims=True)
        var = ((t - mu) ** 2).mean(-1, keepdims=True)
        return (t - mu) / jnp.sqrt(var + LN_EPS) * g + b

    attn_dense = ctx @ p["w_ad"].T + p["b_ad"]
    attn_out = ln(attn_dense + x, p["ln1_g"], p["ln1_b"])
    inter = attn_out @ p["w_i"].T + p["b_i"]
    act = inter * 0.5 * (1.0 + jax.lax.erf(inter / math.sqrt(2.0)))
    ffn = act @ p["w_o"].T + p["b_o"]
    out = ln(ffn + attn_out, p["ln2_g"], p["ln2_b"])
    return out, probs


if __name__ == "__main__":
    key = jax.random.PRNGKey(0)
    ks = jax.random.split(key, 18)

    hidden_states = jax.random.normal(ks[0], (BATCH, SEQ, HIDDEN), jnp.float32)
    # Additive attention mask: last two tokens of batch 1 masked out.
    pad = jnp.zeros((BATCH, SEQ), jnp.float32).at[1, -2:].set(-10000.0)
    attention_mask = pad[:, None, None, :]          # (B, 1, 1, S)

    def lin(kw, kb, out_f, in_f):
        bound = 1.0 / math.sqrt(in_f)
        w = jax.random.uniform(kw, (out_f, in_f), jnp.float32, -bound, bound)
        b = jax.random.uniform(kb, (out_f,), jnp.float32, -bound, bound)
        return w, b

    wq, bq = lin(ks[1], ks[2], HIDDEN, HIDDEN)
    wk, bk = lin(ks[3], ks[4], HIDDEN, HIDDEN)
    wv, bv = lin(ks[5], ks[6], HIDDEN, HIDDEN)
    w_ad, b_ad = lin(ks[7], ks[8], HIDDEN, HIDDEN)
    w_i, b_i = lin(ks[9], ks[10], INTERMEDIATE, HIDDEN)
    w_o, b_o = lin(ks[11], ks[12], HIDDEN, INTERMEDIATE)
    ln1_g = 1.0 + 0.1 * jax.random.normal(ks[13], (HIDDEN,), jnp.float32)
    ln1_b = 0.1 * jax.random.normal(ks[14], (HIDDEN,), jnp.float32)
    ln2_g = 1.0 + 0.1 * jax.random.normal(ks[15], (HIDDEN,), jnp.float32)
    ln2_b = 0.1 * jax.random.normal(ks[16], (HIDDEN,), jnp.float32)

    params = dict(wq=wq, bq=bq, wk=wk, bk=bk, wv=wv, bv=bv,
                  w_ad=w_ad, b_ad=b_ad, ln1_g=ln1_g, ln1_b=ln1_b,
                  w_i=w_i, b_i=b_i, w_o=w_o, b_o=b_o,
                  ln2_g=ln2_g, ln2_b=ln2_b)

    ref_out, ref_probs = reference_bert_layer(hidden_states, attention_mask, params)
    nb = default_num_blocks(BATCH)

    # ---- f32 compute path: tight structural-correctness check ----
    packed32 = pack_params(params, jnp.float32)
    out32, probs32 = bert_layer(hidden_states, attention_mask, packed32,
                                output_attentions=True, num_blocks=nb)
    jax.block_until_ready((out32, probs32))
    # Tolerances: pl.reciprocal(approx=True) in the softmax (~1e-3 relative)
    # and tanh-GELU vs exact erf GELU (<~1e-3 absolute).
    np.testing.assert_allclose(np.asarray(probs32), np.asarray(ref_probs),
                               atol=5e-3, rtol=0)
    np.testing.assert_allclose(np.asarray(out32), np.asarray(ref_out),
                               atol=1e-2, rtol=0)

    # ---- bf16 matmul-operand path (default perf path; MXU-native) ----
    packed_bf16 = pack_params(params, jnp.bfloat16)
    out_bf, probs_bf = bert_layer(hidden_states, attention_mask, packed_bf16,
                                  output_attentions=True, num_blocks=nb)
    jax.block_until_ready((out_bf, probs_bf))
    # Looser tolerances for bf16 matmul operands (f32 accumulation everywhere).
    np.testing.assert_allclose(np.asarray(probs_bf), np.asarray(ref_probs),
                               atol=2e-2, rtol=0)
    np.testing.assert_allclose(np.asarray(out_bf), np.asarray(ref_out),
                               atol=4e-2, rtol=0)

    print("KERNEL_OK")
</pallas_src>

<mosaic_0001>
module attributes {stable_mosaic.version = 11 : i64} {
  func.func @_bert_layer_kernel(%arg0: i32, %arg1: memref<2x8x32xf32, #tpu.memory_space<vmem>>, %arg2: memref<2x1x1x8xf32, #tpu.memory_space<vmem>>, %arg3: memref<32x96xf32, #tpu.memory_space<vmem>>, %arg4: memref<1x96xf32, #tpu.memory_space<vmem>>, %arg5: memref<32x32xf32, #tpu.memory_space<vmem>>, %arg6: memref<1x32xf32, #tpu.memory_space<vmem>>, %arg7: memref<1x32xf32, #tpu.memory_space<vmem>>, %arg8: memref<1x32xf32, #tpu.memory_space<vmem>>, %arg9: memref<32x128xf32, #tpu.memory_space<vmem>>, %arg10: memref<1x128xf32, #tpu.memory_space<vmem>>, %arg11: memref<128x32xf32, #tpu.memory_space<vmem>>, %arg12: memref<1x32xf32, #tpu.memory_space<vmem>>, %arg13: memref<1x32xf32, #tpu.memory_space<vmem>>, %arg14: memref<1x32xf32, #tpu.memory_space<vmem>>, %arg15: memref<2x8x32xf32, #tpu.memory_space<vmem>>, %arg16: memref<2x4x8x8xf32, #tpu.memory_space<vmem>>) attributes {dimension_semantics = [#tpu.dimension_semantics<parallel>], iteration_bounds = array<i64: 1>, scalar_prefetch = 0 : i64, scratch_operands = 0 : i64, tpu.core_type = #tpu.core_type<tc>, window_params = [{transform_indices = @transform_0, window_bounds = array<i64: 2, 8, 32>}, {transform_indices = @transform_1, window_bounds = array<i64: 2, 1, 1, 8>}, {pipeline_mode = #tpu.pipeline_mode<synchronous>, transform_indices = @transform_2, window_bounds = array<i64: 32, 96>}, {pipeline_mode = #tpu.pipeline_mode<synchronous>, transform_indices = @transform_3, window_bounds = array<i64: 1, 96>}, {pipeline_mode = #tpu.pipeline_mode<synchronous>, transform_indices = @transform_4, window_bounds = array<i64: 32, 32>}, {pipeline_mode = #tpu.pipeline_mode<synchronous>, transform_indices = @transform_5, window_bounds = array<i64: 1, 32>}, {pipeline_mode = #tpu.pipeline_mode<synchronous>, transform_indices = @transform_6, window_bounds = array<i64: 1, 32>}, {pipeline_mode = #tpu.pipeline_mode<synchronous>, transform_indices = @transform_7, window_bounds = array<i64: 1, 32>}, {pipeline_mode = #tpu.pipeline_mode<synchronous>, transform_indices = @transform_8, window_bounds = array<i64: 32, 128>}, {pipeline_mode = #tpu.pipeline_mode<synchronous>, transform_indices = @transform_9, window_bounds = array<i64: 1, 128>}, {pipeline_mode = #tpu.pipeline_mode<synchronous>, transform_indices = @transform_10, window_bounds = array<i64: 128, 32>}, {pipeline_mode = #tpu.pipeline_mode<synchronous>, transform_indices = @transform_11, window_bounds = array<i64: 1, 32>}, {pipeline_mode = #tpu.pipeline_mode<synchronous>, transform_indices = @transform_12, window_bounds = array<i64: 1, 32>}, {pipeline_mode = #tpu.pipeline_mode<synchronous>, transform_indices = @transform_13, window_bounds = array<i64: 1, 32>}, {transform_indices = @transform_14, window_bounds = array<i64: 2, 8, 32>}, {transform_indices = @transform_15, window_bounds = array<i64: 2, 4, 8, 8>}]} {
    %c0 = arith.constant 0 : index
    %c0_0 = arith.constant 0 : index
    %c0_1 = arith.constant 0 : index
    %0 = vector.load %arg1[%c0, %c0_0, %c0_1] : memref<2x8x32xf32, #tpu.memory_space<vmem>>, vector<2x8x32xf32>
    %1 = vector.shape_cast %0 : vector<2x8x32xf32> to vector<16x32xf32>
    %c0_2 = arith.constant 0 : index
    %c0_3 = arith.constant 0 : index
    %2 = vector.load %arg3[%c0_2, %c0_3] : memref<32x96xf32, #tpu.memory_space<vmem>>, vector<32x96xf32>
    %cst = arith.constant dense<0.000000e+00> : vector<16x96xf32>
    %3 = tpu.matmul %1, %2, %cst {dimension_numbers = #tpu.dot_dimension_numbers<[1], [0], [0], [1], [0, 0, 1, 1], [], []>} : vector<16x32xf32>, vector<32x96xf32>, vector<16x96xf32> -> vector<16x96xf32>
    %c0_4 = arith.constant 0 : index
    %c0_5 = arith.constant 0 : index
    %4 = vector.load %arg4[%c0_4, %c0_5] : memref<1x96xf32, #tpu.memory_space<vmem>>, vector<1x96xf32>
    %5 = vector.broadcast %4 : vector<1x96xf32> to vector<16x96xf32>
    %6 = arith.addf %3, %5 : vector<16x96xf32>
    %7 = vector.extract_strided_slice %6 {offsets = [0, 0], sizes = [8, 96], strides = [1, 1]} : vector<16x96xf32> to vector<8x96xf32>
    %8 = vector.extract_strided_slice %7 {offsets = [0, 0], sizes = [8, 8], strides = [1, 1]} : vector<8x96xf32> to vector<8x8xf32>
    %9 = vector.extract_strided_slice %7 {offsets = [0, 8], sizes = [8, 8], strides = [1, 1]} : vector<8x96xf32> to vector<8x8xf32>
    %10 = vector.extract_strided_slice %7 {offsets = [0, 16], sizes = [8, 8], strides = [1, 1]} : vector<8x96xf32> to vector<8x8xf32>
    %11 = vector.extract_strided_slice %7 {offsets = [0, 24], sizes = [8, 8], strides = [1, 1]} : vector<8x96xf32> to vector<8x8xf32>
    %12 = vector.extract_strided_slice %6 {offsets = [8, 0], sizes = [8, 96], strides = [1, 1]} : vector<16x96xf32> to vector<8x96xf32>
    %13 = vector.extract_strided_slice %12 {offsets = [0, 0], sizes = [8, 8], strides = [1, 1]} : vector<8x96xf32> to vector<8x8xf32>
    %14 = vector.extract_strided_slice %12 {offsets = [0, 8], sizes = [8, 8], strides = [1, 1]} : vector<8x96xf32> to vector<8x8xf32>
    %15 = vector.extract_strided_slice %12 {offsets = [0, 16], sizes = [8, 8], strides = [1, 1]} : vector<8x96xf32> to vector<8x8xf32>
    %16 = vector.extract_strided_slice %12 {offsets = [0, 24], sizes = [8, 8], strides = [1, 1]} : vector<8x96xf32> to vector<8x8xf32>
    %17 = vector.shape_cast %8 : vector<8x8xf32> to vector<1x8x8xf32>
    %18 = vector.shape_cast %9 : vector<8x8xf32> to vector<1x8x8xf32>
    %19 = vector.shape_cast %10 : vector<8x8xf32> to vector<1x8x8xf32>
    %20 = vector.shape_cast %11 : vector<8x8xf32> to vector<1x8x8xf32>
    %21 = vector.shape_cast %13 : vector<8x8xf32> to vector<1x8x8xf32>
    %22 = vector.shape_cast %14 : vector<8x8xf32> to vector<1x8x8xf32>
    %23 = vector.shape_cast %15 : vector<8x8xf32> to vector<1x8x8xf32>
    %24 = vector.shape_cast %16 : vector<8x8xf32> to vector<1x8x8xf32>
    %25 = tpu.concatenate %17, %18, %19, %20, %21, %22, %23, %24 in 0 : vector<1x8x8xf32>, vector<1x8x8xf32>, vector<1x8x8xf32>, vector<1x8x8xf32>, vector<1x8x8xf32>, vector<1x8x8xf32>, vector<1x8x8xf32>, vector<1x8x8xf32> -> vector<8x8x8xf32>
    %26 = vector.extract_strided_slice %6 {offsets = [0, 0], sizes = [8, 96], strides = [1, 1]} : vector<16x96xf32> to vector<8x96xf32>
    %27 = vector.extract_strided_slice %26 {offsets = [0, 32], sizes = [8, 8], strides = [1, 1]} : vector<8x96xf32> to vector<8x8xf32>
    %28 = vector.extract_strided_slice %26 {offsets = [0, 40], sizes = [8, 8], strides = [1, 1]} : vector<8x96xf32> to vector<8x8xf32>
    %29 = vector.extract_strided_slice %26 {offsets = [0, 48], sizes = [8, 8], strides = [1, 1]} : vector<8x96xf32> to vector<8x8xf32>
    %30 = vector.extract_strided_slice %26 {offsets = [0, 56], sizes = [8, 8], strides = [1, 1]} : vector<8x96xf32> to vector<8x8xf32>
    %31 = vector.extract_strided_slice %6 {offsets = [8, 0], sizes = [8, 96], strides = [1, 1]} : vector<16x96xf32> to vector<8x96xf32>
    %32 = vector.extract_strided_slice %31 {offsets = [0, 32], sizes = [8, 8], strides = [1, 1]} : vector<8x96xf32> to vector<8x8xf32>
    %33 = vector.extract_strided_slice %31 {offsets = [0, 40], sizes = [8, 8], strides = [1, 1]} : vector<8x96xf32> to vector<8x8xf32>
    %34 = vector.extract_strided_slice %31 {offsets = [0, 48], sizes = [8, 8], strides = [1, 1]} : vector<8x96xf32> to vector<8x8xf32>
    %35 = vector.extract_strided_slice %31 {offsets = [0, 56], sizes = [8, 8], strides = [1, 1]} : vector<8x96xf32> to vector<8x8xf32>
    %36 = vector.shape_cast %27 : vector<8x8xf32> to vector<1x8x8xf32>
    %37 = vector.shape_cast %28 : vector<8x8xf32> to vector<1x8x8xf32>
    %38 = vector.shape_cast %29 : vector<8x8xf32> to vector<1x8x8xf32>
    %39 = vector.shape_cast %30 : vector<8x8xf32> to vector<1x8x8xf32>
    %40 = vector.shape_cast %32 : vector<8x8xf32> to vector<1x8x8xf32>
    %41 = vector.shape_cast %33 : vector<8x8xf32> to vector<1x8x8xf32>
    %42 = vector.shape_cast %34 : vector<8x8xf32> to vector<1x8x8xf32>
    %43 = vector.shape_cast %35 : vector<8x8xf32> to vector<1x8x8xf32>
    %44 = tpu.concatenate %36, %37, %38, %39, %40, %41, %42, %43 in 0 : vector<1x8x8xf32>, vector<1x8x8xf32>, vector<1x8x8xf32>, vector<1x8x8xf32>, vector<1x8x8xf32>, vector<1x8x8xf32>, vector<1x8x8xf32>, vector<1x8x8xf32> -> vector<8x8x8xf32>
    %45 = vector.extract_strided_slice %6 {offsets = [0, 0], sizes = [8, 96], strides = [1, 1]} : vector<16x96xf32> to vector<8x96xf32>
    %46 = vector.extract_strided_slice %45 {offsets = [0, 64], sizes = [8, 8], strides = [1, 1]} : vector<8x96xf32> to vector<8x8xf32>
    %47 = vector.extract_strided_slice %45 {offsets = [0, 72], sizes = [8, 8], strides = [1, 1]} : vector<8x96xf32> to vector<8x8xf32>
    %48 = vector.extract_strided_slice %45 {offsets = [0, 80], sizes = [8, 8], strides = [1, 1]} : vector<8x96xf32> to vector<8x8xf32>
    %49 = vector.extract_strided_slice %45 {offsets = [0, 88], sizes = [8, 8], strides = [1, 1]} : vector<8x96xf32> to vector<8x8xf32>
    %50 = vector.extract_strided_slice %6 {offsets = [8, 0], sizes = [8, 96], strides = [1, 1]} : vector<16x96xf32> to vector<8x96xf32>
    %51 = vector.extract_strided_slice %50 {offsets = [0, 64], sizes = [8, 8], strides = [1, 1]} : vector<8x96xf32> to vector<8x8xf32>
    %52 = vector.extract_strided_slice %50 {offsets = [0, 72], sizes = [8, 8], strides = [1, 1]} : vector<8x96xf32> to vector<8x8xf32>
    %53 = vector.extract_strided_slice %50 {offsets = [0, 80], sizes = [8, 8], strides = [1, 1]} : vector<8x96xf32> to vector<8x8xf32>
    %54 = vector.extract_strided_slice %50 {offsets = [0, 88], sizes = [8, 8], strides = [1, 1]} : vector<8x96xf32> to vector<8x8xf32>
    %55 = vector.shape_cast %46 : vector<8x8xf32> to vector<1x8x8xf32>
    %56 = vector.shape_cast %47 : vector<8x8xf32> to vector<1x8x8xf32>
    %57 = vector.shape_cast %48 : vector<8x8xf32> to vector<1x8x8xf32>
    %58 = vector.shape_cast %49 : vector<8x8xf32> to vector<1x8x8xf32>
    %59 = vector.shape_cast %51 : vector<8x8xf32> to vector<1x8x8xf32>
    %60 = vector.shape_cast %52 : vector<8x8xf32> to vector<1x8x8xf32>
    %61 = vector.shape_cast %53 : vector<8x8xf32> to vector<1x8x8xf32>
    %62 = vector.shape_cast %54 : vector<8x8xf32> to vector<1x8x8xf32>
    %63 = tpu.concatenate %55, %56, %57, %58, %59, %60, %61, %62 in 0 : vector<1x8x8xf32>, vector<1x8x8xf32>, vector<1x8x8xf32>, vector<1x8x8xf32>, vector<1x8x8xf32>, vector<1x8x8xf32>, vector<1x8x8xf32>, vector<1x8x8xf32> -> vector<8x8x8xf32>
    "tpu.trace_start"() <{level = 10 : i32, message = "nqd,nkd->nqk"}> : () -> ()
    %cst_6 = arith.constant dense<0.000000e+00> : vector<8x8x8xf32>
    %64 = tpu.matmul %25, %44, %cst_6 {dimension_numbers = #tpu.dot_dimension_numbers<[2], [2], [1], [1], [0, 0, 0, 1, 1, 1], [0], [0]>} : vector<8x8x8xf32>, vector<8x8x8xf32>, vector<8x8x8xf32> -> vector<8x8x8xf32>
    "tpu.trace_stop"() : () -> ()
    %c0_7 = arith.constant 0 : index
    %c0_8 = arith.constant 0 : index
    %c0_9 = arith.constant 0 : index
    %c0_10 = arith.constant 0 : index
    %65 = vector.load %arg2[%c0_7, %c0_8, %c0_9, %c0_10] : memref<2x1x1x8xf32, #tpu.memory_space<vmem>>, vector<2x1x1x8xf32>
    %66 = vector.extract_strided_slice %65 {offsets = [0, 0, 0, 0], sizes = [1, 1, 1, 8], strides = [1, 1, 1, 1]} : vector<2x1x1x8xf32> to vector<1x1x1x8xf32>
    %67 = vector.shape_cast %66 : vector<1x1x1x8xf32> to vector<1x8xf32>
    %68 = vector.shape_cast %67 : vector<1x8xf32> to vector<1x1x8xf32>
    %69 = vector.broadcast %68 : vector<1x1x8xf32> to vector<4x1x8xf32>
    %70 = vector.extract_strided_slice %65 {offsets = [1, 0, 0, 0], sizes = [1, 1, 1, 8], strides = [1, 1, 1, 1]} : vector<2x1x1x8xf32> to vector<1x1x1x8xf32>
    %71 = vector.shape_cast %70 : vector<1x1x1x8xf32> to vector<1x8xf32>
    %72 = vector.shape_cast %71 : vector<1x8xf32> to vector<1x1x8xf32>
    %73 = vector.broadcast %72 : vector<1x1x8xf32> to vector<4x1x8xf32>
    %74 = tpu.concatenate %69, %73 in 0 : vector<4x1x8xf32>, vector<4x1x8xf32> -> vector<8x1x8xf32>
    %75 = vector.broadcast %74 : vector<8x1x8xf32> to vector<8x8x8xf32>
    %76 = arith.addf %64, %75 : vector<8x8x8xf32>
    %cst_11 = arith.constant dense<0xFF800000> : vector<8x8xf32>
    %77 = vector.multi_reduction <maximumf>, %76, %cst_11 [2] : vector<8x8x8xf32> to vector<8x8xf32>
    %78 = vector.shape_cast %77 : vector<8x8xf32> to vector<8x8x1xf32>
    %79 = vector.broadcast %78 : vector<8x8x1xf32> to vector<8x8x8xf32>
    %80 = arith.subf %76, %79 : vector<8x8x8xf32>
    %81 = math.exp %80 : vector<8x8x8xf32>
    %cst_12 = arith.constant dense<0.000000e+00> : vector<8x8xf32>
    %82 = vector.multi_reduction <add>, %81, %cst_12 [2] : vector<8x8x8xf32> to vector<8x8xf32>
    %83 = vector.shape_cast %82 : vector<8x8xf32> to vector<8x8x1xf32>
    %84 = tpu.reciprocal %83 {approx = true} : vector<8x8x1xf32> -> vector<8x8x1xf32>
    %85 = vector.broadcast %84 : vector<8x8x1xf32> to vector<8x8x8xf32>
    %86 = arith.mulf %81, %85 : vector<8x8x8xf32>
    %87 = vector.shape_cast %86 : vector<8x8x8xf32> to vector<2x4x8x8xf32>
    %c0_13 = arith.constant 0 : index
    %c0_14 = arith.constant 0 : index
    %c0_15 = arith.constant 0 : index
    %c0_16 = arith.constant 0 : index
    %88 = vector.load %arg16[%c0_13, %c0_14, %c0_15, %c0_16] : memref<2x4x8x8xf32, #tpu.memory_space<vmem>>, vector<2x4x8x8xf32>
    tpu.vector_store %arg16[%c0_13, %c0_14, %c0_15, %c0_16], %87 {strides = array<i32>} : memref<2x4x8x8xf32, #tpu.memory_space<vmem>>, vector<2x4x8x8xf32>,
    "tpu.trace_start"() <{level = 10 : i32, message = "nqk,nkd->nqd"}> : () -> ()
    %cst_17 = arith.constant dense<0.000000e+00> : vector<8x8x8xf32>
    %89 = tpu.matmul %86, %63, %cst_17 {dimension_numbers = #tpu.dot_dimension_numbers<[2], [1], [1], [2], [0, 0, 0, 1, 1, 2], [0], [0]>} : vector<8x8x8xf32>, vector<8x8x8xf32>, vector<8x8x8xf32> -> vector<8x8x8xf32>
    "tpu.trace_stop"() : () -> ()
    %90 = vector.extract_strided_slice %89 {offsets = [0, 0, 0], sizes = [1, 8, 8], strides = [1, 1, 1]} : vector<8x8x8xf32> to vector<1x8x8xf32>
    %91 = vector.shape_cast %90 : vector<1x8x8xf32> to vector<8x8xf32>
    %92 = vector.extract_strided_slice %89 {offsets = [1, 0, 0], sizes = [1, 8, 8], strides = [1, 1, 1]} : vector<8x8x8xf32> to vector<1x8x8xf32>
    %93 = vector.shape_cast %92 : vector<1x8x8xf32> to vector<8x8xf32>
    %94 = vector.extract_strided_slice %89 {offsets = [2, 0, 0], sizes = [1, 8, 8], strides = [1, 1, 1]} : vector<8x8x8xf32> to vector<1x8x8xf32>
    %95 = vector.shape_cast %94 : vector<1x8x8xf32> to vector<8x8xf32>
    %96 = vector.extract_strided_slice %89 {offsets = [3, 0, 0], sizes = [1, 8, 8], strides = [1, 1, 1]} : vector<8x8x8xf32> to vector<1x8x8xf32>
    %97 = vector.shape_cast %96 : vector<1x8x8xf32> to vector<8x8xf32>
    %98 = tpu.concatenate %91, %93, %95, %97 in 1 : vector<8x8xf32>, vector<8x8xf32>, vector<8x8xf32>, vector<8x8xf32> -> vector<8x32xf32>
    %99 = vector.extract_strided_slice %89 {offsets = [4, 0, 0], sizes = [1, 8, 8], strides = [1, 1, 1]} : vector<8x8x8xf32> to vector<1x8x8xf32>
    %100 = vector.shape_cast %99 : vector<1x8x8xf32> to vector<8x8xf32>
    %101 = vector.extract_strided_slice %89 {offsets = [5, 0, 0], sizes = [1, 8, 8], strides = [1, 1, 1]} : vector<8x8x8xf32> to vector<1x8x8xf32>
    %102 = vector.shape_cast %101 : vector<1x8x8xf32> to vector<8x8xf32>
    %103 = vector.extract_strided_slice %89 {offsets = [6, 0, 0], sizes = [1, 8, 8], strides = [1, 1, 1]} : vector<8x8x8xf32> to vector<1x8x8xf32>
    %104 = vector.shape_cast %103 : vector<1x8x8xf32> to vector<8x8xf32>
    %105 = vector.extract_strided_slice %89 {offsets = [7, 0, 0], sizes = [1, 8, 8], strides = [1, 1, 1]} : vector<8x8x8xf32> to vector<1x8x8xf32>
    %106 = vector.shape_cast %105 : vector<1x8x8xf32> to vector<8x8xf32>
    %107 = tpu.concatenate %100, %102, %104, %106 in 1 : vector<8x8xf32>, vector<8x8xf32>, vector<8x8xf32>, vector<8x8xf32> -> vector<8x32xf32>
    %108 = tpu.concatenate %98, %107 in 0 : vector<8x32xf32>, vector<8x32xf32> -> vector<16x32xf32>
    %c0_18 = arith.constant 0 : index
    %c0_19 = arith.constant 0 : index
    %109 = vector.load %arg5[%c0_18, %c0_19] : memref<32x32xf32, #tpu.memory_space<vmem>>, vector<32x32xf32>
    %cst_20 = arith.constant dense<0.000000e+00> : vector<16x32xf32>
    %110 = tpu.matmul %108, %109, %cst_20 {dimension_numbers = #tpu.dot_dimension_numbers<[1], [0], [0], [1], [0, 0, 1, 1], [], []>} : vector<16x32xf32>, vector<32x32xf32>, vector<16x32xf32> -> vector<16x32xf32>
    %c0_21 = arith.constant 0 : index
    %c0_22 = arith.constant 0 : index
    %111 = vector.load %arg6[%c0_21, %c0_22] : memref<1x32xf32, #tpu.memory_space<vmem>>, vector<1x32xf32>
    %112 = vector.broadcast %111 : vector<1x32xf32> to vector<16x32xf32>
    %113 = arith.addf %110, %112 : vector<16x32xf32>
    %114 = arith.addf %113, %1 : vector<16x32xf32>
    %c0_23 = arith.constant 0 : index
    %c0_24 = arith.constant 0 : index
    %115 = vector.load %arg7[%c0_23, %c0_24] : memref<1x32xf32, #tpu.memory_space<vmem>>, vector<1x32xf32>
    %c0_25 = arith.constant 0 : index
    %c0_26 = arith.constant 0 : index
    %116 = vector.load %arg8[%c0_25, %c0_26] : memref<1x32xf32, #tpu.memory_space<vmem>>, vector<1x32xf32>
    %cst_27 = arith.constant dense<0.000000e+00> : vector<16xf32>
    %117 = vector.multi_reduction <add>, %114, %cst_27 [1] : vector<16x32xf32> to vector<16xf32>
    %118 = vector.shape_cast %117 : vector<16xf32> to vector<16x1xf32>
    %cst_28 = arith.constant 3.200000e+01 : f32
    %119 = vector.broadcast %cst_28 : f32 to vector<16x1xf32>
    %120 = arith.divf %118, %119 : vector<16x1xf32>
    %121 = vector.broadcast %120 : vector<16x1xf32> to vector<16x32xf32>
    %122 = arith.subf %114, %121 : vector<16x32xf32>
    %123 = arith.mulf %122, %122 : vector<16x32xf32>
    %cst_29 = arith.constant dense<0.000000e+00> : vector<16xf32>
    %124 = vector.multi_reduction <add>, %123, %cst_29 [1] : vector<16x32xf32> to vector<16xf32>
    %125 = vector.shape_cast %124 : vector<16xf32> to vector<16x1xf32>
    %cst_30 = arith.constant 3.200000e+01 : f32
    %126 = vector.broadcast %cst_30 : f32 to vector<16x1xf32>
    %127 = arith.divf %125, %126 : vector<16x1xf32>
    %128 = vector.broadcast %120 : vector<16x1xf32> to vector<16x32xf32>
    %129 = arith.subf %114, %128 : vector<16x32xf32>
    %cst_31 = arith.constant 9.99999996E-13 : f32
    %130 = vector.broadcast %cst_31 : f32 to vector<16x1xf32>
    %131 = arith.addf %127, %130 : vector<16x1xf32>
    %132 = math.rsqrt %131 : vector<16x1xf32>
    %133 = vector.broadcast %132 : vector<16x1xf32> to vector<16x32xf32>
    %134 = arith.mulf %129, %133 : vector<16x32xf32>
    %135 = vector.broadcast %115 : vector<1x32xf32> to vector<16x32xf32>
    %136 = arith.mulf %134, %135 : vector<16x32xf32>
    %137 = vector.broadcast %116 : vector<1x32xf32> to vector<16x32xf32>
    %138 = arith.addf %136, %137 : vector<16x32xf32>
    %c0_32 = arith.constant 0 : index
    %c0_33 = arith.constant 0 : index
    %139 = vector.load %arg9[%c0_32, %c0_33] : memref<32x128xf32, #tpu.memory_space<vmem>>, vector<32x128xf32>
    %cst_34 = arith.constant dense<0.000000e+00> : vector<16x128xf32>
    %140 = tpu.matmul %138, %139, %cst_34 {dimension_numbers = #tpu.dot_dimension_numbers<[1], [0], [0], [1], [0, 0, 1, 1], [], []>} : vector<16x32xf32>, vector<32x128xf32>, vector<16x128xf32> -> vector<16x128xf32>
    %c0_35 = arith.constant 0 : index
    %c0_36 = arith.constant 0 : index
    %141 = vector.load %arg10[%c0_35, %c0_36] : memref<1x128xf32, #tpu.memory_space<vmem>>, vector<1x128xf32>
    %142 = vector.broadcast %141 : vector<1x128xf32> to vector<16x128xf32>
    %143 = arith.addf %140, %142 : vector<16x128xf32>
    %cst_37 = arith.constant 5.000000e-01 : f32
    %144 = vector.broadcast %cst_37 : f32 to vector<16x128xf32>
    %145 = arith.mulf %144, %143 : vector<16x128xf32>
    %cst_38 = arith.constant 4.471500e-02 : f32
    %146 = vector.broadcast %cst_38 : f32 to vector<16x128xf32>
    %147 = arith.mulf %146, %143 : vector<16x128xf32>
    %148 = arith.mulf %147, %143 : vector<16x128xf32>
    %149 = arith.mulf %148, %143 : vector<16x128xf32>
    %150 = arith.addf %143, %149 : vector<16x128xf32>
    %cst_39 = arith.constant 0.797884583 : f32
    %151 = vector.broadcast %cst_39 : f32 to vector<16x128xf32>
    %152 = arith.mulf %151, %150 : vector<16x128xf32>
    %153 = math.tanh %152 : vector<16x128xf32>
    %cst_40 = arith.constant 1.000000e+00 : f32
    %154 = vector.broadcast %cst_40 : f32 to vector<16x128xf32>
    %155 = arith.addf %154, %153 : vector<16x128xf32>
    %156 = arith.mulf %145, %155 : vector<16x128xf32>
    %c0_41 = arith.constant 0 : index
    %c0_42 = arith.constant 0 : index
    %157 = vector.load %arg11[%c0_41, %c0_42] : memref<128x32xf32, #tpu.memory_space<vmem>>, vector<128x32xf32>
    %cst_43 = arith.constant dense<0.000000e+00> : vector<16x32xf32>
    %158 = tpu.matmul %156, %157, %cst_43 {dimension_numbers = #tpu.dot_dimension_numbers<[1], [0], [0], [1], [0, 0, 1, 1], [], []>} : vector<16x128xf32>, vector<128x32xf32>, vector<16x32xf32> -> vector<16x32xf32>
    %c0_44 = arith.constant 0 : index
    %c0_45 = arith.constant 0 : index
    %159 = vector.load %arg12[%c0_44, %c0_45] : memref<1x32xf32, #tpu.memory_space<vmem>>, vector<1x32xf32>
    %160 = vector.broadcast %159 : vector<1x32xf32> to vector<16x32xf32>
    %161 = arith.addf %158, %160 : vector<16x32xf32>
    %162 = arith.addf %161, %138 : vector<16x32xf32>
    %c0_46 = arith.constant 0 : index
    %c0_47 = arith.constant 0 : index
    %163 = vector.load %arg13[%c0_46, %c0_47] : memref<1x32xf32, #tpu.memory_space<vmem>>, vector<1x32xf32>
    %c0_48 = arith.constant 0 : index
    %c0_49 = arith.constant 0 : index
    %164 = vector.load %arg14[%c0_48, %c0_49] : memref<1x32xf32, #tpu.memory_space<vmem>>, vector<1x32xf32>
    %cst_50 = arith.constant dense<0.000000e+00> : vector<16xf32>
    %165 = vector.multi_reduction <add>, %162, %cst_50 [1] : vector<16x32xf32> to vector<16xf32>
    %166 = vector.shape_cast %165 : vector<16xf32> to vector<16x1xf32>
    %cst_51 = arith.constant 3.200000e+01 : f32
    %167 = vector.broadcast %cst_51 : f32 to vector<16x1xf32>
    %168 = arith.divf %166, %167 : vector<16x1xf32>
    %169 = vector.broadcast %168 : vector<16x1xf32> to vector<16x32xf32>
    %170 = arith.subf %162, %169 : vector<16x32xf32>
    %171 = arith.mulf %170, %170 : vector<16x32xf32>
    %cst_52 = arith.constant dense<0.000000e+00> : vector<16xf32>
    %172 = vector.multi_reduction <add>, %171, %cst_52 [1] : vector<16x32xf32> to vector<16xf32>
    %173 = vector.shape_cast %172 : vector<16xf32> to vector<16x1xf32>
    %cst_53 = arith.constant 3.200000e+01 : f32
    %174 = vector.broadcast %cst_53 : f32 to vector<16x1xf32>
    %175 = arith.divf %173, %174 : vector<16x1xf32>
    %176 = vector.broadcast %168 : vector<16x1xf32> to vector<16x32xf32>
    %177 = arith.subf %162, %176 : vector<16x32xf32>
    %cst_54 = arith.constant 9.99999996E-13 : f32
    %178 = vector.broadcast %cst_54 : f32 to vector<16x1xf32>
    %179 = arith.addf %175, %178 : vector<16x1xf32>
    %180 = math.rsqrt %179 : vector<16x1xf32>
    %181 = vector.broadcast %180 : vector<16x1xf32> to vector<16x32xf32>
    %182 = arith.mulf %177, %181 : vector<16x32xf32>
    %183 = vector.broadcast %163 : vector<1x32xf32> to vector<16x32xf32>
    %184 = arith.mulf %182, %183 : vector<16x32xf32>
    %185 = vector.broadcast %164 : vector<1x32xf32> to vector<16x32xf32>
    %186 = arith.addf %184, %185 : vector<16x32xf32>
    %187 = vector.shape_cast %186 : vector<16x32xf32> to vector<2x8x32xf32>
    %c0_55 = arith.constant 0 : index
    %c0_56 = arith.constant 0 : index
    %c0_57 = arith.constant 0 : index
    %188 = vector.load %arg15[%c0_55, %c0_56, %c0_57] : memref<2x8x32xf32, #tpu.memory_space<vmem>>, vector<2x8x32xf32>
    tpu.vector_store %arg15[%c0_55, %c0_56, %c0_57], %187 {strides = array<i32>} : memref<2x8x32xf32, #tpu.memory_space<vmem>>, vector<2x8x32xf32>,
    return
  }
  func.func @transform_0(%arg0: i32) -> (i32, i32, i32) {
    %c0_i32 = arith.constant 0 : i32
    %c0_i32_0 = arith.constant 0 : i32
    %c0_i32_1 = arith.constant 0 : i32
    return %arg0, %c0_i32, %c0_i32_0 : i32, i32, i32
  }
  func.func @transform_1(%arg0: i32) -> (i32, i32, i32, i32) {
    %c0_i32 = arith.constant 0 : i32
    %c0_i32_0 = arith.constant 0 : i32
    %c0_i32_1 = arith.constant 0 : i32
    %c0_i32_2 = arith.constant 0 : i32
    return %arg0, %c0_i32, %c0_i32_0, %c0_i32_1 : i32, i32, i32, i32
  }
  func.func @transform_2(%arg0: i32) -> (i32, i32) {
    %c0_i32 = arith.constant 0 : i32
    %c0_i32_0 = arith.constant 0 : i32
    %c0_i32_1 = arith.constant 0 : i32
    return %c0_i32, %c0_i32_0 : i32, i32
  }
  func.func @transform_3(%arg0: i32) -> (i32, i32) {
    %c0_i32 = arith.constant 0 : i32
    %c0_i32_0 = arith.constant 0 : i32
    %c0_i32_1 = arith.constant 0 : i32
    return %c0_i32, %c0_i32_0 : i32, i32
  }
  func.func @transform_4(%arg0: i32) -> (i32, i32) {
    %c0_i32 = arith.constant 0 : i32
    %c0_i32_0 = arith.constant 0 : i32
    %c0_i32_1 = arith.constant 0 : i32
    return %c0_i32, %c0_i32_0 : i32, i32
  }
  func.func @transform_5(%arg0: i32) -> (i32, i32) {
    %c0_i32 = arith.constant 0 : i32
    %c0_i32_0 = arith.constant 0 : i32
    %c0_i32_1 = arith.constant 0 : i32
    return %c0_i32, %c0_i32_0 : i32, i32
  }
  func.func @transform_6(%arg0: i32) -> (i32, i32) {
    %c0_i32 = arith.constant 0 : i32
    %c0_i32_0 = arith.constant 0 : i32
    %c0_i32_1 = arith.constant 0 : i32
    return %c0_i32, %c0_i32_0 : i32, i32
  }
  func.func @transform_7(%arg0: i32) -> (i32, i32) {
    %c0_i32 = arith.constant 0 : i32
    %c0_i32_0 = arith.constant 0 : i32
    %c0_i32_1 = arith.constant 0 : i32
    return %c0_i32, %c0_i32_0 : i32, i32
  }
  func.func @transform_8(%arg0: i32) -> (i32, i32) {
    %c0_i32 = arith.constant 0 : i32
    %c0_i32_0 = arith.constant 0 : i32
    %c0_i32_1 = arith.constant 0 : i32
    return %c0_i32, %c0_i32_0 : i32, i32
  }
  func.func @transform_9(%arg0: i32) -> (i32, i32) {
    %c0_i32 = arith.constant 0 : i32
    %c0_i32_0 = arith.constant 0 : i32
    %c0_i32_1 = arith.constant 0 : i32
    return %c0_i32, %c0_i32_0 : i32, i32
  }
  func.func @transform_10(%arg0: i32) -> (i32, i32) {
    %c0_i32 = arith.constant 0 : i32
    %c0_i32_0 = arith.constant 0 : i32
    %c0_i32_1 = arith.constant 0 : i32
    return %c0_i32, %c0_i32_0 : i32, i32
  }
  func.func @transform_11(%arg0: i32) -> (i32, i32) {
    %c0_i32 = arith.constant 0 : i32
    %c0_i32_0 = arith.constant 0 : i32
    %c0_i32_1 = arith.constant 0 : i32
    return %c0_i32, %c0_i32_0 : i32, i32
  }
  func.func @transform_12(%arg0: i32) -> (i32, i32) {
    %c0_i32 = arith.constant 0 : i32
    %c0_i32_0 = arith.constant 0 : i32
    %c0_i32_1 = arith.constant 0 : i32
    return %c0_i32, %c0_i32_0 : i32, i32
  }
  func.func @transform_13(%arg0: i32) -> (i32, i32) {
    %c0_i32 = arith.constant 0 : i32
    %c0_i32_0 = arith.constant 0 : i32
    %c0_i32_1 = arith.constant 0 : i32
    return %c0_i32, %c0_i32_0 : i32, i32
  }
  func.func @transform_14(%arg0: i32) -> (i32, i32, i32) {
    %c0_i32 = arith.constant 0 : i32
    %c0_i32_0 = arith.constant 0 : i32
    %c0_i32_1 = arith.constant 0 : i32
    return %arg0, %c0_i32, %c0_i32_0 : i32, i32, i32
  }
  func.func @transform_15(%arg0: i32) -> (i32, i32, i32, i32) {
    %c0_i32 = arith.constant 0 : i32
    %c0_i32_0 = arith.constant 0 : i32
    %c0_i32_1 = arith.constant 0 : i32
    %c0_i32_2 = arith.constant 0 : i32
    return %arg0, %c0_i32, %c0_i32_0, %c0_i32_1 : i32, i32, i32, i32
  }
}

</mosaic_0001>

<bundles_post_ra>
// kernel: bert_layer.1
= control target key start
LH: loop header
LB: loop body
LE: loop exit
PB: predicated region body
PF: predicated region fallthrough
CT: control target
= control target key end

     0   :  { %21 = vsyncpa [#allocation3], 0  ;;  %vm64_vm0 = vcmask 261120   ;;  %s2808_s0 = inlined_call_operand.vmem [shape: f32[2,8,32], index: 0, kind: input, shape index: {}]   ;;  %s2809_s1 = inlined_call_operand.vmem [shape: f32[2,1,1,8], index: 1, kind: input, shape index: {}]   ;;  %s2810_s2 = inlined_call_operand.vmem [shape: f32[32,96], index: 2, kind: input, shape index: {}]   ;;  %s2811_s3 = inlined_call_operand.vmem [shape: f32[1,96], index: 3, kind: input, shape index: {}]   ;;  %s2812_s4 = inlined_call_operand.vmem [shape: f32[32,32], index: 4, kind: input, shape index: {}]   ;;  %s2813_s5 = inlined_call_operand.vmem [shape: f32[1,32], index: 5, kind: input, shape index: {}]   ;;  %s2814_s6 = inlined_call_operand.vmem [shape: f32[1,32], index: 6, kind: input, shape index: {}]   ;;  %s2815_s7 = inlined_call_operand.vmem [shape: f32[1,32], index: 7, kind: input, shape index: {}]   ;;  %s2816_s8 = inlined_call_operand.vmem [shape: f32[32,128], index: 8, kind: input, shape index: {}]   ;;  %s2817_s9 = inlined_call_operand.vmem [shape: f32[1,128], index: 9, kind: input, shape index: {}]   ;;  %s2818_s10 = inlined_call_operand.vmem [shape: f32[128,32], index: 10, kind: input, shape index: {}]   ;;  %s2819_s11 = inlined_call_operand.vmem [shape: f32[1,32], index: 11, kind: input, shape index: {}]   ;;  %s2820_s12 = inlined_call_operand.vmem [shape: f32[1,32], index: 12, kind: input, shape index: {}]   ;;  %s2821_s13 = inlined_call_operand.vmem [shape: f32[1,32], index: 13, kind: input, shape index: {}]   ;;  %s2822_s14 = inlined_call_operand.hbm [shape: f32[2,8,32], index: 14, kind: output, shape index: {0}]   ;;  %s2823_s15 = inlined_call_operand.hbm [shape: f32[2,4,8,8], index: 15, kind: output, shape index: {1}]  }
   0x1   :  { %v53_v0 = vld [vmem:[%s2810_s2] sm:$0xff]  ;;  %v54_v1 = vld [vmem:[%s2810_s2 + $0x8] sm:$0xff]  ;;  %v55_v2 = vld [vmem:[%s2810_s2 + $0x10] sm:$0xff] }
   0x2   :  { %v2202_v3 = vpack.c.bf16 %v54_v1, %v53_v0  ;;  %v56_v4 = vld [vmem:[%s2810_s2 + $0x18] sm:$0xff]  ;;  %v2471_v5 = vld [vmem:[%s2808_s0] sm:$0xff] }
   0x3   :  { %v2206_v6 = vpack.c.bf16 %v56_v4, %v55_v2  ;;  %2062 = vmatprep.mubr.msk.f32.mxu1 %vm64_vm0, %v2471_v5 }
   0x4   :  { %22 = vsyncpa [#allocation5], 0  ;;  %2203 = vmatprep.subr.bf16.mxu1 %v2202_v3  ;;  %v2478_v7 = vld [vmem:[%s2808_s0 + $0x8] sm:$0xff]  ;;  %v1946_v8 = vld [vmem:[%s2811_s3] ss:$0 sm:$0xff]  ;;  %v2363_v10 = vmov 0.0  }
   0x5   :  { %2205 = vmatpush3.bf16.msra.mxu1 %v2202_v3  ;;  %2075 = vmatprep.subr.mxu0 %v2363_v10  ;;  %s2364_s16 = smov 104   ;;  %s2365_s0 = smov 120   ;;  %vm2366_vm1 = vmmov 0   ;;  %vm176_vm2 = vcmask 64512   ;;  %v1949_v28 = vld [vmem:[%s2809_s1] ss:$0 sm:$0xff] }
   0x6   :  { %2207 = vmatprep.subr.bf16.mxu1 %v2206_v6  ;;  %2077 = vmatprep.mubr.msk.f32.mxu0 %vm2366_vm1, %v2363_v10  ;;  %s2367_s3 = smov 112   ;;  %s2368_s17 = smov 96   ;;  %v1950_v42 = vld [vmem:[%s2809_s1 + $0x1] ss:$0 sm:$0xff]  ;;  %vm1500_vm3 = vcmask 130048   ;;  %vm1502_vm4 = vcmask 195584  }
   0x7   :  { %s2369_s1 = smov 64   ;;  %s2370_s26 = smov 8  }
   0x8   :  { %s2371_s30 = smov 16  }
   0x9   :  { %2209 = vmatpush3.bf16.msra.mxu1 %v2206_v6 }
   0xa   :  { %2065 = vmatprep.subr.mxu1 %v2363_v10 }
   0xc   :  { %2063 = vmatmul.mubr.msk.f32.vlgmr.msra.gmra.mrb[0].mxu1 %vm64_vm0, %v2478_v7 }
   0xd   :  { %2067 = vmatprep.mubr.msk.f32.mxu1 %vm2366_vm1, %v2363_v10 }
  0xdf   :  { %v2064_v9 = vpop.f32.mrb[0].mxu1 }
  0xe0   :  { %v137_v11 = vpop.f32.mrb[1].mxu1  ;;  %v2495_v13 = vadd.f32 %v2064_v9, %v1946_v8 }
  0xe1   :  { %v2487_v12 = vadd.f32 %v1946_v8, %v137_v11 }
  0xe3   :  { %151 = vrot.lane.b32.xlu1 %v2487_v12, %s2364_s16  ;;  %147 = vrot.lane.b32.xlu0 %v2487_v12, %s2365_s0 }
  0xe7   :  { %154 = vrot.lane.b32.xlu1 %v2495_v13, %s2365_s0  ;;  %149 = vrot.lane.b32.xlu0 %v2487_v12, %s2367_s3 }
  0xeb   :  { %158 = vrot.lane.b32.xlu1 %v2495_v13, %s2364_s16  ;;  %156 = vrot.lane.b32.xlu0 %v2495_v13, %s2367_s3  ;;  %s2372_s16 = smov 24  }
  0xef   :  { %174 = vrot.lane.b32.xlu0 %v2487_v12, %s2368_s17 }
 0x155   :  { %v2502_v14 = vpop.permute.xlu1 %151  ;;  %v2504_v15 = vpop.permute.xlu0 %147 }
 0x156   :  { %251 = vrot.lane.b32.xlu1 %v2504_v15, %s2368_s17 }
 0x159   :  { %v2507_v16 = vpop.permute.xlu0 %149  ;;  %v2511_v17 = vpop.permute.xlu1 %154 }
 0x15a   :  { %403 = vrot.lane.b32.xlu1 %v2502_v14, %s2368_s17  ;;  %327 = vrot.lane.b32.xlu0 %v2507_v16, %s2368_s17 }
 0x15d   :  { %v2513_v18 = vpop.permute.xlu0 %156  ;;  %v2517_v19 = vpop.permute.xlu1 %158 }
 0x15e   :  { %555 = vrot.lane.b32.xlu1 %v2511_v17, %s2368_s17  ;;  %479 = vrot.lane.b32.xlu0 %v2495_v13, %s2368_s17 }
 0x161   :  { %v175_v20 = vpop.permute.xlu0 %174 }
 0x162   :  { %707 = vrot.lane.b32.xlu1 %v2517_v19, %s2368_s17  ;;  %631 = vrot.lane.b32.xlu0 %v2513_v18, %s2368_s17 }
 0x163   :  { %2066 = vmatpush3.xpose.msk.msra.mxu1 %vm176_vm2, %v175_v20 }
 0x164   :  { %2070 = vmatprep.subr.mxu1 %v2363_v10 }
 0x166   :  { %2068 = vmatmul.mubr.msk.f32.vlgmr.msra.gmra.mrb[2].mxu1 %vm176_vm2, %v2487_v12 }
 0x167   :  { %2072 = vmatprep.mubr.msk.f32.mxu1 %vm2366_vm1, %v2363_v10 }
 0x1c8   :  { %v252_v21 = vpop.permute.xlu1 %251 }
 0x1c9   :  { %2071 = vmatpush3.xpose.msk.msra.mxu1 %vm176_vm2, %v252_v21 }
 0x1ca   :  { %2080 = vmatprep.subr.mxu1 %v2363_v10 }
 0x1cc   :  { %v404_v22 = vpop.permute.xlu1 %403  ;;  %2073 = vmatmul.mubr.msk.f32.vlgmr.msra.gmra.mrb[4].mxu1 %vm176_vm2, %v2504_v15  ;;  %v328_v23 = vpop.permute.xlu0 %327 }
 0x1cd   :  { %2076 = vmatpush3.xpose.msk.msra.mxu0 %vm176_vm2, %v328_v23  ;;  %2081 = vmatpush3.xpose.msk.msra.mxu1 %vm176_vm2, %v404_v22 }
 0x1ce   :  { %2082 = vmatprep.mubr.msk.f32.mxu1 %vm2366_vm1, %v2363_v10  ;;  %2085 = vmatprep.subr.mxu0 %v2363_v10 }
 0x1cf   :  { %2090 = vmatprep.subr.mxu1 %v2363_v10 }
 0x1d0   :  { %v556_v24 = vpop.permute.xlu1 %555  ;;  %2078 = vmatmul.mubr.msk.f32.vlgmr.msra.gmra.mrb[0].mxu0 %vm176_vm2, %v2507_v16  ;;  %2083 = vmatmul.mubr.msk.f32.vlgmr.msra.gmra.mrb[6].mxu1 %vm176_vm2, %v2502_v14  ;;  %v480_v25 = vpop.permute.xlu0 %479 }
 0x1d1   :  { %2086 = vmatpush3.xpose.msk.msra.mxu0 %vm176_vm2, %v480_v25  ;;  %2091 = vmatpush3.xpose.msk.msra.mxu1 %vm176_vm2, %v556_v24 }
 0x1d2   :  { %2087 = vmatprep.mubr.msk.f32.mxu0 %vm2366_vm1, %v2363_v10  ;;  %2092 = vmatprep.mubr.msk.f32.mxu1 %vm2366_vm1, %v2363_v10 }
 0x1d3   :  { %2095 = vmatprep.subr.mxu0 %v2363_v10  ;;  %2100 = vmatprep.subr.mxu1 %v2363_v10 }
 0x1d4   :  { %v708_v26 = vpop.permute.xlu1 %707  ;;  %2088 = vmatmul.mubr.msk.f32.vlgmr.msra.gmra.mrb[2].mxu0 %vm176_vm2, %v2495_v13  ;;  %2093 = vmatmul.mubr.msk.f32.vlgmr.msra.gmra.mrb[8].mxu1 %vm176_vm2, %v2511_v17  ;;  %v632_v27 = vpop.permute.xlu0 %631 }
 0x1d5   :  { %2096 = vmatpush3.xpose.msk.msra.mxu0 %vm176_vm2, %v632_v27  ;;  %2101 = vmatpush3.xpose.msk.msra.mxu1 %vm176_vm2, %v708_v26 }
 0x1d6   :  { %2097 = vmatprep.mubr.msk.f32.mxu0 %vm2366_vm1, %v2363_v10  ;;  %2102 = vmatprep.mubr.msk.f32.mxu1 %vm2366_vm1, %v2363_v10 }
 0x1d7   :  { %2105 = vmatprep.subr.mxu0 %v2363_v10  ;;  %2110 = vmatprep.subr.mxu1 %v2363_v10 }
 0x1d8   :  { %2098 = vmatmul.mubr.msk.f32.vlgmr.msra.gmra.mrb[4].mxu0 %vm176_vm2, %v2513_v18  ;;  %2103 = vmatmul.mubr.msk.f32.vlgmr.msra.gmra.mrb[10].mxu1 %vm176_vm2, %v2517_v19 }
 0x1d9   :  { %2107 = vmatprep.mubr.msk.f32.mxu0 %vm2366_vm1, %v2363_v10  ;;  %2112 = vmatprep.mubr.msk.f32.mxu1 %vm2366_vm1, %v2363_v10 }
 0x239   :  { %v247_v29 = vpop.f32.mrb[2].mxu1 }
 0x23a   :  { %v248_v30 = vadd.f32 %v1949_v28, %v247_v29  ;;  %v2069_v31 = vpop.f32.mrb[3].mxu1 }
 0x23c   :  { %v783_v32 = vsel %vm176_vm2, %v248_v30, -inf }
 0x23d   :  { %784 = vmax.xlane.f32.xlu0 %v783_v32 }
 0x29f   :  { %v323_v33 = vpop.f32.mrb[4].mxu1 }
 0x2a0   :  { %v324_v34 = vadd.f32 %v1949_v28, %v323_v33  ;;  %v2074_v35 = vpop.f32.mrb[5].mxu1 }
 0x2a2   :  { %v786_v36 = vsel %vm176_vm2, %v324_v34, -inf }
 0x2a3   :  { %787 = vmax.xlane.f32.xlu1 %v786_v36  ;;  %v399_v37 = vpop.f32.mrb[0].mxu0  ;;  %v475_v38 = vpop.f32.mrb[6].mxu1 }
 0x2a4   :  { %v400_v39 = vadd.f32 %v1949_v28, %v399_v37  ;;  %v2079_v40 = vpop.f32.mrb[1].mxu0  ;;  %v2084_v41 = vpop.f32.mrb[7].mxu1  ;;  %v476_v43 = vadd.f32 %v1949_v28, %v475_v38 }
 0x2a6   :  { %v789_v44 = vsel %vm176_vm2, %v400_v39, -inf  ;;  %v792_v51 = vsel %vm176_vm2, %v476_v43, -inf }
 0x2a7   :  { %v627_v45 = vpop.f32.mrb[8].mxu1  ;;  %790 = vmax.xlane.f32.xlu0 %v789_v44  ;;  %v551_v46 = vpop.f32.mrb[2].mxu0 }
 0x2a8   :  { %v552_v47 = vadd.f32 %v1950_v42, %v551_v46  ;;  %v2089_v48 = vpop.f32.mrb[3].mxu0  ;;  %v2094_v49 = vpop.f32.mrb[9].mxu1  ;;  %v628_v50 = vadd.f32 %v1950_v42, %v627_v45 }
 0x2aa   :  { %v795_v52 = vsel %vm176_vm2, %v552_v47, -inf  ;;  %v798_v59 = vsel %vm176_vm2, %v628_v50, -inf }
 0x2ab   :  { %v779_v53 = vpop.f32.mrb[10].mxu1  ;;  %793 = vmax.xlane.f32.xlu0 %v792_v51  ;;  %796 = vmax.xlane.f32.xlu1 %v795_v52  ;;  %v703_v54 = vpop.f32.mrb[4].mxu0 }
 0x2ac   :  { %v704_v55 = vadd.f32 %v1950_v42, %v703_v54  ;;  %v2099_v56 = vpop.f32.mrb[5].mxu0  ;;  %v2104_v57 = vpop.f32.mrb[11].mxu1  ;;  %v780_v58 = vadd.f32 %v1950_v42, %v779_v53 }
 0x2ae   :  { %v801_v60 = vsel %vm176_vm2, %v704_v55, -inf  ;;  %v804_v61 = vsel %vm176_vm2, %v780_v58, -inf }
 0x2af   :  { %799 = vmax.xlane.f32.xlu0 %v798_v59  ;;  %802 = vmax.xlane.f32.xlu1 %v801_v60 }
 0x2b3   :  { %805 = vmax.xlane.f32.xlu0 %v804_v61 }
 0x2c0   :  { %879 = vrot.lane.b32.xlu1 %v2487_v12, %s2369_s1 }
 0x2c4   :  { %1031 = vrot.lane.b32.xlu1 %v2507_v16, %s2369_s1 }
 0x2c8   :  { %1107 = vrot.lane.b32.xlu1 %v2502_v14, %s2369_s1 }
 0x2c9   :  { %955 = vrot.lane.b32.xlu0 %v2504_v15, %s2369_s1 }
 0x2ca   :  { %v785_v62 = vpop.xlane.xlu0 %784 }
 0x2cb   :  { %v807_v63 = vsub.f32 %v248_v30, %v785_v62 }
 0x2cc   :  { %1259 = vrot.lane.b32.xlu1 %v2511_v17, %s2369_s1 }
 0x2cd   :  { %1183 = vrot.lane.b32.xlu0 %v2495_v13, %s2369_s1  ;;  %v815_v0 = vmul.f32 1.442695, %v807_v63 }
 0x2cf   :  { %2271 = vpow2.f32 %v815_v0 }
 0x2d9   :  { %v2595_v1 = vpop.eup %2271 }
 0x2da   :  { %v831_v2 = vsel %vm176_vm2, %v2595_v1, 0.0 }
 0x2f0   :  { %832 = vadd.xlane.f32.xlu1 %v831_v2 }
 0x330   :  { %v788_v3 = vpop.xlane.xlu1 %787 }
 0x331   :  { %v808_v4 = vsub.f32 %v324_v34, %v788_v3 }
 0x333   :  { %v817_v6 = vmul.f32 1.442695, %v808_v4 }
 0x334   :  { %v791_v8 = vpop.xlane.xlu0 %790 }
 0x335   :  { %2273 = vpow2.f32 %v817_v6  ;;  %v809_v9 = vsub.f32 %v400_v39, %v791_v8 }
 0x337   :  { %v819_v11 = vmul.f32 1.442695, %v809_v9 }
 0x338   :  { %v797_v12 = vpop.xlane.xlu1 %796  ;;  %v794_v14 = vpop.xlane.xlu0 %793 }
 0x339   :  { %2275 = vpow2.f32 %v819_v11  ;;  %v811_v13 = vsub.f32 %v552_v47, %v797_v12  ;;  %v810_v15 = vsub.f32 %v476_v43, %v794_v14 }
 0x33b   :  { %v823_v16 = vmul.f32 1.442695, %v811_v13  ;;  %v821_v17 = vmul.f32 1.442695, %v810_v15  ;;  %v1519_v13 = vld [vmem:[%s2812_s4] sm:$0xff]  ;;  %v1520_v15 = vld [vmem:[%s2812_s4 + $0x8] sm:$0xff] }
 0x33c   :  { %v803_v20 = vpop.xlane.xlu1 %802  ;;  %v800_v21 = vpop.xlane.xlu0 %799 }
 0x33d   :  { %2277 = vpow2.f32 %v823_v16  ;;  %v813_v22 = vsub.f32 %v704_v55, %v803_v20  ;;  %v812_v23 = vsub.f32 %v628_v50, %v800_v21  ;;  %v2210_v16 = vpack.c.bf16 %v1520_v15, %v1519_v13  ;;  %v1521_v20 = vld [vmem:[%s2812_s4 + $0x10] sm:$0xff]  ;;  %v1522_v21 = vld [vmem:[%s2812_s4 + $0x18] sm:$0xff] }
 0x33e   :  { %2279 = vpow2.f32 %v821_v17 }
 0x33f   :  { %v2274_v24 = vpop.eup %2273  ;;  %v827_v25 = vmul.f32 1.442695, %v813_v22  ;;  %v825_v26 = vmul.f32 1.442695, %v812_v23  ;;  %v2214_v22 = vpack.c.bf16 %v1522_v21, %v1521_v20  ;;  %v1979_v20 = vld [vmem:[%s2815_s7] ss:$0 sm:$0xff] }
 0x340   :  { %v880_v27 = vpop.permute.xlu1 %879  ;;  %v806_v28 = vpop.xlane.xlu0 %805  ;;  %v834_v29 = vsel %vm176_vm2, %v2274_v24, 0.0 }
 0x341   :  { %2281 = vpow2.f32 %v827_v25  ;;  %v814_v30 = vsub.f32 %v780_v58, %v806_v28  ;;  %835 = vadd.xlane.f32.xlu0 %v834_v29  ;;  %2106 = vmatpush3.msra.mxu0 %v880_v27 }
 0x342   :  { %2283 = vpow2.f32 %v825_v26  ;;  %2115 = vmatprep.subr.mxu0 %v2363_v10 }
 0x343   :  { %v2276_v31 = vpop.eup %2275  ;;  %v829_v32 = vmul.f32 1.442695, %v814_v30 }
 0x344   :  { %v956_v33 = vpop.permute.xlu0 %955  ;;  %v837_v34 = vsel %vm176_vm2, %v2276_v31, 0.0  ;;  %v1032_v45 = vpop.permute.xlu1 %1031 }
 0x345   :  { %2285 = vpow2.f32 %v829_v32  ;;  %838 = vadd.xlane.f32.xlu1 %v837_v34  ;;  %2111 = vmatpush3.msra.mxu1 %v956_v33 }
 0x346   :  { %2120 = vmatprep.subr.mxu1 %v2363_v10 }
 0x347   :  { %v2278_v35 = vpop.eup %2277 }
 0x348   :  { %v2280_v36 = vpop.eup %2279  ;;  %v843_v37 = vsel %vm176_vm2, %v2278_v35, 0.0  ;;  %v1108_v46 = vpop.permute.xlu1 %1107 }
 0x349   :  { %844 = vadd.xlane.f32.xlu1 %v843_v37  ;;  %v840_v38 = vsel %vm176_vm2, %v2280_v36, 0.0 }
 0x34a   :  { %841 = vadd.xlane.f32.xlu0 %v840_v38 }
 0x34b   :  { %v2605_v39 = vpop.eup %2281 }
 0x34c   :  { %v2607_v40 = vpop.eup %2283  ;;  %v849_v41 = vsel %vm176_vm2, %v2605_v39, 0.0  ;;  %v1260_v47 = vpop.permute.xlu1 %1259 }
 0x34d   :  { %850 = vadd.xlane.f32.xlu1 %v849_v41  ;;  %v846_v42 = vsel %vm176_vm2, %v2607_v40, 0.0 }
 0x34e   :  { %847 = vadd.xlane.f32.xlu0 %v846_v42 }
 0x34f   :  { %v2613_v43 = vpop.eup %2285 }
 0x350   :  { %v852_v44 = vsel %vm176_vm2, %v2613_v43, 0.0 }
 0x352   :  { %853 = vadd.xlane.f32.xlu0 %v852_v44 }
 0x35e   :  { %1411 = vrot.lane.b32.xlu1 %v2517_v19, %s2369_s1  ;;  %v1184_v19 = vpop.permute.xlu0 %1183 }
 0x368   :  { %1335 = vrot.lane.b32.xlu0 %v2513_v18, %s2369_s1 }
 0x37d   :  { %v833_v48 = vpop.xlane.xlu1 %832 }
 0x37e   :  { %2287 = vrcp.f32 %v833_v48 }
 0x388   :  { %v2288_v49 = vpop.eup %2287 }
 0x389   :  { %v863_v50 = vmul.f32 %v2288_v49, %v2595_v1 }
 0x38b   :  { %871 = vst.msk [vmem:[#allocation4] sm:$0xff] %vm176_vm2, %v863_v50  ;;  %2108 = vmatmul.mubr.msk.f32.vlgmr.msra.gmra.mrb[6].mxu0 %vm176_vm2, %v863_v50 }
 0x38c   :  { %2116 = vmatpush3.msra.mxu0 %v1032_v45  ;;  %2117 = vmatprep.mubr.msk.f32.mxu0 %vm2366_vm1, %v2363_v10 }
 0x38d   :  { %2125 = vmatprep.subr.mxu0 %v2363_v10 }
 0x3ce   :  { %v836_v18 = vpop.xlane.xlu0 %835 }
 0x3cf   :  { %2289 = vrcp.f32 %v836_v18 }
 0x3d2   :  { %v839_v51 = vpop.xlane.xlu1 %838 }
 0x3d3   :  { %2291 = vrcp.f32 %v839_v51 }
 0x3d6   :  { %v845_v52 = vpop.xlane.xlu1 %844 }
 0x3d7   :  { %2293 = vrcp.f32 %v845_v52  ;;  %v842_v53 = vpop.xlane.xlu0 %841 }
 0x3d8   :  { %2295 = vrcp.f32 %v842_v53 }
 0x3d9   :  { %v2290_v54 = vpop.eup %2289 }
 0x3da   :  { %v864_v55 = vmul.f32 %v2290_v54, %v2274_v24  ;;  %v851_v56 = vpop.xlane.xlu1 %850 }
 0x3db   :  { %2297 = vrcp.f32 %v851_v56  ;;  %v848_v57 = vpop.xlane.xlu0 %847 }
 0x3dc   :  { %872 = vst.msk [vmem:[#allocation4 + $0x8] sm:$0xff] %vm176_vm2, %v864_v55  ;;  %2299 = vrcp.f32 %v848_v57  ;;  %2113 = vmatmul.mubr.msk.f32.vlgmr.msra.gmra.mrb[12].mxu1 %vm176_vm2, %v864_v55 }
 0x3dd   :  { %v2292_v58 = vpop.eup %2291  ;;  %2121 = vmatpush3.msra.mxu1 %v1108_v46  ;;  %2122 = vmatprep.mubr.msk.f32.mxu1 %vm2366_vm1, %v2363_v10 }
 0x3de   :  { %v865_v59 = vmul.f32 %v2292_v58, %v2276_v31  ;;  %2130 = vmatprep.subr.mxu1 %v2363_v10  ;;  %v1412_v8 = vpop.permute.xlu1 %1411 }
 0x3df   :  { %v854_v60 = vpop.xlane.xlu0 %853 }
 0x3e0   :  { %873 = vst.msk [vmem:[#allocation4 + $0x10] sm:$0xff] %vm176_vm2, %v865_v59  ;;  %2301 = vrcp.f32 %v854_v60  ;;  %2118 = vmatmul.mubr.msk.f32.vlgmr.msra.gmra.mrb[8].mxu0 %vm176_vm2, %v865_v59 }
 0x3e1   :  { %v2294_v61 = vpop.eup %2293  ;;  %2126 = vmatpush3.msra.mxu0 %v1184_v19  ;;  %2127 = vmatprep.mubr.msk.f32.mxu0 %vm2366_vm1, %v2363_v10 }
 0x3e2   :  { %v2296_v62 = vpop.eup %2295  ;;  %v867_v63 = vmul.f32 %v2294_v61, %v2278_v35  ;;  %2135 = vmatprep.subr.mxu0 %v2363_v10 }
 0x3e3   :  { %v866_v0 = vmul.f32 %v2296_v62, %v2280_v36  ;;  %v1336_v1 = vpop.permute.xlu0 %1335 }
 0x3e4   :  { %875 = vst.msk [vmem:[#allocation4 + $0x20] sm:$0xff] %vm176_vm2, %v867_v63  ;;  %2128 = vmatmul.mubr.msk.f32.vlgmr.msra.gmra.mrb[10].mxu0 %vm176_vm2, %v867_v63  ;;  %v1659_v63 = vld [vmem:[%s2816_s8 + $0x8] sm:$0xff] }
 0x3e5   :  { %v2298_v2 = vpop.eup %2297  ;;  %874 = vst.msk [vmem:[#allocation4 + $0x18] sm:$0xff] %vm176_vm2, %v866_v0  ;;  %2123 = vmatmul.mubr.msk.f32.vlgmr.msra.gmra.mrb[14].mxu1 %vm176_vm2, %v866_v0  ;;  %2136 = vmatpush3.msra.mxu0 %v1336_v1  ;;  %v1660_v1 = vld [vmem:[%s2816_s8 + $0x10] sm:$0xff] }
 0x3e6   :  { %v2300_v3 = vpop.eup %2299  ;;  %v869_v4 = vmul.f32 %v2298_v2, %v2605_v39  ;;  %2131 = vmatpush3.msra.mxu1 %v1260_v47  ;;  %2132 = vmatprep.mubr.msk.f32.mxu1 %vm2366_vm1, %v2363_v10  ;;  %v1975_v47 = vld [vmem:[%s2813_s5] ss:$0 sm:$0xff]  ;;  %v1661_v2 = vld [vmem:[%s2816_s8 + $0x18] sm:$0xff] }
 0x3e7   :  { %v868_v6 = vmul.f32 %v2300_v3, %v2607_v40  ;;  %2137 = vmatprep.mubr.msk.f32.mxu0 %vm2366_vm1, %v2363_v10  ;;  %2140 = vmatprep.subr.mxu1 %v2363_v10  ;;  %v2222_v3 = vpack.c.bf16 %v1661_v2, %v1660_v1 }
 0x3e8   :  { %877 = vst.msk [vmem:[#allocation4 + $0x30] sm:$0xff] %vm176_vm2, %v869_v4  ;;  %2138 = vmatmul.mubr.msk.f32.vlgmr.msra.gmra.mrb[12].mxu0 %vm176_vm2, %v869_v4  ;;  %v1768_v4 = vld [vmem:[%s2818_s10] sm:$0xff] }
 0x3e9   :  { %876 = vst.msk [vmem:[#allocation4 + $0x28] sm:$0xff] %vm176_vm2, %v868_v6  ;;  %2133 = vmatmul.mubr.msk.f32.vlgmr.msra.gmra.mrb[16].mxu1 %vm176_vm2, %v868_v6  ;;  %v1769_v6 = vld [vmem:[%s2818_s10 + $0x8] sm:$0xff] }
 0x3ea   :  { %v2302_v9 = vpop.eup %2301  ;;  %2141 = vmatpush3.msra.mxu1 %v1412_v8  ;;  %2142 = vmatprep.mubr.msk.f32.mxu1 %vm2366_vm1, %v2363_v10  ;;  %v2226_v8 = vpack.c.bf16 %v1769_v6, %v1768_v4 }
 0x3eb   :  { %v870_v11 = vmul.f32 %v2302_v9, %v2613_v43  ;;  %2211 = vmatprep.subr.bf16.mxu1 %v2210_v16 }
 0x3ec   :  { %2227 = vmatprep.subr.bf16.mxu0 %v2226_v8 }
 0x3ed   :  { %878 = vst.msk [vmem:[#allocation4 + $0x38] sm:$0xff] %vm176_vm2, %v870_v11  ;;  %2143 = vmatmul.mubr.msk.f32.vlgmr.msra.gmra.mrb[18].mxu1 %vm176_vm2, %v870_v11  ;;  %2229 = vmatpush3.bf16.msra.mxu0 %v2226_v8 }
 0x3ee   :  { %2213 = vmatpush3.bf16.msra.mxu1 %v2210_v16 }
 0x3ef   :  { %2215 = vmatprep.subr.bf16.mxu1 %v2214_v22 }
 0x3f2   :  { %2217 = vmatpush3.bf16.msra.mxu1 %v2214_v22 }
 0x45e   :  { %v951_v12 = vpop.f32.mrb[6].mxu0 }
 0x45f   :  { %v2109_v14 = vpop.f32.mrb[7].mxu0 }
 0x4af   :  { %v1027_v17 = vpop.f32.mrb[12].mxu1 }
 0x4b0   :  { %1488 = vrot.lane.b32.xlu0 %v1027_v17, %s2370_s26  ;;  %v2114_v10 = vpop.f32.mrb[13].mxu1  ;;  %v1978_v17 = vld [vmem:[%s2814_s6] ss:$0 sm:$0xff] }
 0x4b3   :  { %v1103_v23 = vpop.f32.mrb[8].mxu0 }
 0x4b4   :  { %1492 = vrot.lane.b32.xlu1 %v1103_v23, %s2371_s30  ;;  %v2119_v24 = vpop.f32.mrb[9].mxu0 }
 0x4b7   :  { %v1255_v25 = vpop.f32.mrb[10].mxu0 }
 0x4b8   :  { %v1179_v26 = vpop.f32.mrb[14].mxu1  ;;  %v2129_v27 = vpop.f32.mrb[11].mxu0 }
 0x4b9   :  { %1496 = vrot.lane.b32.xlu1 %v1179_v26, %s2372_s16  ;;  %v2124_v28 = vpop.f32.mrb[15].mxu1  ;;  %v1770_v27 = vld [vmem:[%s2818_s10 + $0x10] sm:$0xff] }
 0x4ba   :  { %v1771_v28 = vld [vmem:[%s2818_s10 + $0x18] sm:$0xff] }
 0x4bb   :  { %v1407_v29 = vpop.f32.mrb[12].mxu0 }
 0x4bc   :  { %v1331_v30 = vpop.f32.mrb[16].mxu1  ;;  %v2139_v31 = vpop.f32.mrb[13].mxu0 }
 0x4bd   :  { %1505 = vrot.lane.b32.xlu0 %v1331_v30, %s2370_s26  ;;  %v2134_v32 = vpop.f32.mrb[17].mxu1  ;;  %v1772_v30 = vld [vmem:[%s2818_s10 + $0x20] sm:$0xff]  ;;  %v1773_v31 = vld [vmem:[%s2818_s10 + $0x28] sm:$0xff] }
 0x4be   :  { %v2234_v32 = vpack.c.bf16 %v1773_v31, %v1772_v30 }
 0x4c0   :  { %v1483_v33 = vpop.f32.mrb[18].mxu1 }
 0x4c1   :  { %1513 = vrot.lane.b32.xlu1 %v1483_v33, %s2372_s16  ;;  %v2144_v34 = vpop.f32.mrb[19].mxu1  ;;  %1509 = vrot.lane.b32.xlu0 %v1407_v29, %s2371_s30  ;;  %v2230_v29 = vpack.c.bf16 %v1771_v28, %v1770_v27  ;;  %v1774_v33 = vld [vmem:[%s2818_s10 + $0x30] sm:$0xff] }
 0x4c2   :  { %v1775_v34 = vld [vmem:[%s2818_s10 + $0x38] sm:$0xff] }
 0x4c3   :  { %2231 = vmatprep.subr.bf16.mxu0 %v2230_v29 }
 0x4c4   :  { %2233 = vmatpush3.bf16.msra.mxu0 %v2230_v29 }
 0x4c5   :  { %2235 = vmatprep.subr.bf16.mxu0 %v2234_v32 }
 0x4c8   :  { %2237 = vmatpush3.bf16.msra.mxu0 %v2234_v32 }
 0x522   :  { %v1489_v36 = vpop.permute.xlu0 %1488 }
 0x523   :  { %v1499_v37 = vsel %vm176_vm2, %v951_v12, %v1489_v36  ;;  %v1776_v36 = vld [vmem:[%s2818_s10 + $0x40] sm:$0xff] }
 0x526   :  { %v1493_v35 = vpop.permute.xlu1 %1492 }
 0x527   :  { %v1501_v38 = vsel %vm1500_vm3, %v1499_v37, %v1493_v35  ;;  %v2238_v35 = vpack.c.bf16 %v1775_v34, %v1774_v33  ;;  %v1777_v37 = vld [vmem:[%s2818_s10 + $0x48] sm:$0xff] }
 0x529   :  { %2239 = vmatprep.subr.bf16.mxu0 %v2238_v35 }
 0x52a   :  { %2241 = vmatpush3.bf16.msra.mxu0 %v2238_v35 }
 0x52b   :  { %v1497_v39 = vpop.permute.xlu1 %1496 }
 0x52c   :  { %v1503_v40 = vsel %vm1502_vm4, %v1501_v38, %v1497_v39  ;;  %v2242_v38 = vpack.c.bf16 %v1777_v37, %v1776_v36  ;;  %v1778_v39 = vld [vmem:[%s2818_s10 + $0x50] sm:$0xff] }
 0x52d   :  { %2153 = vmatprep.mubr.msk.f32.mxu1 %vm64_vm0, %v1503_v40  ;;  %v1779_v40 = vld [vmem:[%s2818_s10 + $0x58] sm:$0xff] }
 0x52e   :  { %2243 = vmatprep.subr.bf16.mxu0 %v2242_v38 }
 0x52f   :  { %v1506_v41 = vpop.permute.xlu0 %1505  ;;  %2245 = vmatpush3.bf16.msra.mxu0 %v2242_v38 }
 0x530   :  { %v1516_v42 = vsel %vm176_vm2, %v1255_v25, %v1506_v41  ;;  %v2246_v41 = vpack.c.bf16 %v1779_v40, %v1778_v39 }
 0x532   :  { %2247 = vmatprep.subr.bf16.mxu0 %v2246_v41 }
 0x533   :  { %v1514_v43 = vpop.permute.xlu1 %1513  ;;  %v1510_v44 = vpop.permute.xlu0 %1509  ;;  %2249 = vmatpush3.bf16.msra.mxu0 %v2246_v41 }
 0x534   :  { %v1517_v45 = vsel %vm1500_vm3, %v1516_v42, %v1510_v44  ;;  %v1780_v42 = vld [vmem:[%s2818_s10 + $0x60] sm:$0xff] }
 0x535   :  { %v1518_v46 = vsel %vm1502_vm4, %v1517_v45, %v1514_v43  ;;  %v1781_v43 = vld [vmem:[%s2818_s10 + $0x68] sm:$0xff]  ;;  %v1782_v45 = vld [vmem:[%s2818_s10 + $0x70] sm:$0xff] }
 0x536   :  { %2154 = vmatmul.mubr.msk.f32.vlgmr.msra.gmra.mrb[20].mxu1 %vm64_vm0, %v1518_v46  ;;  %v2250_v44 = vpack.c.bf16 %v1781_v43, %v1780_v42  ;;  %v1783_v46 = vld [vmem:[%s2818_s10 + $0x78] sm:$0xff] }
 0x538   :  { %2251 = vmatprep.subr.bf16.mxu0 %v2250_v44 }
 0x539   :  { %2253 = vmatpush3.bf16.msra.mxu0 %v2250_v44 }
 0x609   :  { %v2155_v48 = vpop.f32.mrb[20].mxu1 }
 0x60a   :  { %v1608_v49 = vadd.f32 %v2155_v48, %v1975_v47  ;;  %v1602_v50 = vpop.f32.mrb[21].mxu1  ;;  %v1980_v48 = vld [vmem:[%s2817_s9] ss:$0 sm:$0xff] }
 0x60b   :  { %v1603_v19 = vadd.f32 %v1975_v47, %v1602_v50  ;;  %v2254_v47 = vpack.c.bf16 %v1783_v46, %v1782_v45 }
 0x60c   :  { %v1612_v18 = vadd.f32 %v1608_v49, %v2478_v7 }
 0x60d   :  { %v1611_v51 = vadd.f32 %v1603_v19, %v2471_v5  ;;  %v1658_v5 = vld [vmem:[%s2816_s8] sm:$0xff]  ;;  %2255 = vmatprep.subr.bf16.mxu0 %v2254_v47 }
 0x60e   :  { %v1618_v52 = vsel %vm64_vm0, %v1612_v18, 0.0  ;;  %v2218_v0 = vpack.c.bf16 %v1659_v63, %v1658_v5  ;;  %2257 = vmatpush3.bf16.msra.mxu0 %v2254_v47 }
 0x60f   :  { %1619 = vadd.xlane.f32.xlu1 %v1618_v52  ;;  %v1615_v53 = vsel %vm64_vm0, %v1611_v51, 0.0 }
 0x610   :  { %1616 = vadd.xlane.f32.xlu0 %v1615_v53  ;;  %2219 = vmatprep.subr.bf16.mxu1 %v2218_v0 }
 0x611   :  { %2221 = vmatpush3.bf16.msra.mxu1 %v2218_v0 }
 0x612   :  { %2223 = vmatprep.subr.bf16.mxu1 %v2222_v3 }
 0x615   :  { %2225 = vmatpush3.bf16.msra.mxu1 %v2222_v3  ;;  %v1983_v3 = vld [vmem:[%s2819_s11] ss:$0 sm:$0xff]  ;;  %s2373_s11 = smov [#allocation4]  }
 0x616   :  { %s1931_s5 = sshll.u32 %s2373_s11, 4  ;;  %s1932_s5 = int_to_ptr.vmem [resolvable:$true] %s1931_s5 }
 0x617   :  { %s2315_s3 = scalar_lea.vmem %s1932_s5, 1024  ;;  %p2320_p1 = scmp.lt.s32.totalorder %s1932_s5, %s1932_s5 }
 0x618   :  { %p2316_p0 = scmp.ne.s32.totalorder %s1932_s5, %s2315_s3  ;;  %p2321_p2 = scmp.lt.s32.totalorder %s2315_s3, %s2315_s3 }
 0x61a   :  { %p2322_p3 = por %p2321_p2, %p2320_p1 }
 0x61c   :  { %p2323_p4 = pnand %p2322_p3, %p2316_p0 }
 0x69c   :  { %v1620_v54 = vpop.xlane.xlu1 %1619 }
 0x69d   :  { %v1623_v55 = vmul.f32 0.03125, %v1620_v54  ;;  %v1617_v56 = vpop.xlane.xlu0 %1616 }
 0x69e   :  { %v1622_v57 = vmul.f32 0.03125, %v1617_v56 }
 0x69f   :  { %v1625_v58 = vsub.f32 %v1612_v18, %v1623_v55 }
 0x6a0   :  { %v1624_v59 = vsub.f32 %v1611_v51, %v1622_v57 }
 0x6a1   :  { %v1627_v62 = vmul.f32 %v1625_v58, %v1625_v58 }
 0x6a2   :  { %v1626_v60 = vmul.f32 %v1624_v59, %v1624_v59 }
 0x6a3   :  { %v1631_v7 = vsel %vm64_vm0, %v1627_v62, 0.0 }
 0x6a4   :  { %v1628_v61 = vsel %vm64_vm0, %v1626_v60, 0.0 }
 0x6a5   :  { %1629 = vadd.xlane.f32.xlu0 %v1628_v61 }
 0x6a9   :  { %1632 = vadd.xlane.f32.xlu0 %v1631_v7 }
 0x732   :  { %v1630_v9 = vpop.xlane.xlu0 %1629 }
 0x733   :  { %v1634_v11 = vmul.f32 0.03125, %v1630_v9 }
 0x735   :  { %v1636_v12 = vadd.f32 1e-12, %v1634_v11 }
 0x736   :  { %v1633_v14 = vpop.xlane.xlu0 %1632 }
 0x737   :  { %2303 = vrsqrt.f32 %v1636_v12  ;;  %v1635_v13 = vmul.f32 0.03125, %v1633_v14 }
 0x739   :  { %v1637_v15 = vadd.f32 1e-12, %v1635_v13 }
 0x73b   :  { %2305 = vrsqrt.f32 %v1637_v15 }
 0x741   :  { %v2304_v16 = vpop.eup %2303 }
 0x742   :  { %v1640_v10 = vmul.f32 %v2304_v16, %v1624_v59 }
 0x744   :  { %v1648_v21 = vmul.f32 %v1978_v17, %v1640_v10 }
 0x745   :  { %v2306_v22 = vpop.eup %2305 }
 0x746   :  { %v1641_v23 = vmul.f32 %v2306_v22, %v1625_v58  ;;  %v2708_v24 = vadd.f32 %v1979_v20, %v1648_v21 }
 0x748   :  { %v1649_v25 = vmul.f32 %v1978_v17, %v1641_v23  ;;  %2164 = vmatprep.mubr.msk.f32.mxu1 %vm64_vm0, %v2708_v24 }
 0x74a   :  { %v2712_v26 = vadd.f32 %v1979_v20, %v1649_v25 }
 0x74c   :  { %2165 = vmatmul.mubr.msk.f32.vlgmr.msra.gmra.mrb[22].mxu1 %vm64_vm0, %v2712_v26 }
 0x81f   :  { %v2166_v49 = vpop.f32.mrb[22].mxu1 }
 0x820   :  { %v1747_v50 = vadd.f32 %v2166_v49, %v1980_v48  ;;  %v1741_v19 = vpop.f32.mrb[23].mxu1 }
 0x821   :  { %v1742_v18 = vadd.f32 %v1980_v48, %v1741_v19 }
 0x822   :  { %v1753_v51 = vmul.f32 0.044715, %v1747_v50  ;;  %v1751_v0 = vmul.f32 0.5, %v1747_v50 }
 0x823   :  { %v1752_v52 = vmul.f32 0.044715, %v1742_v18  ;;  %v1750_v5 = vmul.f32 0.5, %v1742_v18 }
 0x824   :  { %v1755_v53 = vmul.f32 %v1753_v51, %v1747_v50 }
 0x825   :  { %v1754_v54 = vmul.f32 %v1752_v52, %v1742_v18 }
 0x826   :  { %v1757_v55 = vmul.f32 %v1755_v53, %v1747_v50 }
 0x827   :  { %v1756_v56 = vmul.f32 %v1754_v54, %v1742_v18 }
 0x828   :  { %v1759_v57 = vadd.f32 %v1757_v55, %v1747_v50 }
 0x829   :  { %v1758_v58 = vadd.f32 %v1756_v56, %v1742_v18 }
 0x82a   :  { %v1761_v59 = vmul.f32 0.7978846, %v1759_v57 }
 0x82b   :  { %v1760_v60 = vmul.f32 0.7978846, %v1758_v58 }
 0x82c   :  { %2307 = vtanh.f32 %v1761_v59 }
 0x82d   :  { %2309 = vtanh.f32 %v1760_v60 }
 0x836   :  { %v2308_v61 = vpop.eup %2307 }
 0x837   :  { %v2310_v62 = vpop.eup %2309  ;;  %v1765_v7 = vadd.f32 1.0, %v2308_v61 }
 0x838   :  { %v1764_v63 = vadd.f32 1.0, %v2310_v62 }
 0x839   :  { %v1767_v2 = vmul.f32 %v1765_v7, %v1751_v0 }
 0x83a   :  { %v1766_v1 = vmul.f32 %v1764_v63, %v1750_v5 }
 0x83c   :  { %2199 = vmatprep.mubr.f32.mxu0 %v1766_v1 }
 0x83d   :  { %2200 = vmatmul.mubr.f32.vlgmr.msra.gmra.mrb[14].mxu0 %v1767_v2 }
 0x910   :  { %v2201_v4 = vpop.f32.mrb[14].mxu0 }
 0x911   :  { %v1863_v6 = vadd.f32 %v2201_v4, %v1983_v3  ;;  %v1857_v8 = vpop.f32.mrb[15].mxu0 }
 0x912   :  { %v1858_v9 = vadd.f32 %v1983_v3, %v1857_v8 }
 0x913   :  { %v1867_v11 = vadd.f32 %v1863_v6, %v2712_v26 }
 0x914   :  { %v1866_v12 = vadd.f32 %v1858_v9, %v2708_v24 }
 0x915   :  { %v1873_v14 = vsel %vm64_vm0, %v1867_v11, 0.0 }
 0x916   :  { %1874 = vadd.xlane.f32.xlu0 %v1873_v14  ;;  %v1870_v13 = vsel %vm64_vm0, %v1866_v12, 0.0 }
 0x917   :  { %1871 = vadd.xlane.f32.xlu1 %v1870_v13 }
 0x9a3   :  { %v1875_v15 = vpop.xlane.xlu0 %1874 }
 0x9a4   :  { %v1877_v16 = vmul.f32 0.03125, %v1875_v15  ;;  %v1872_v17 = vpop.xlane.xlu1 %1871 }
 0x9a5   :  { %v1876_v10 = vmul.f32 0.03125, %v1872_v17 }
 0x9a6   :  { %v1879_v20 = vsub.f32 %v1867_v11, %v1877_v16 }
 0x9a7   :  { %v1878_v21 = vsub.f32 %v1866_v12, %v1876_v10 }
 0x9a8   :  { %v1881_v22 = vmul.f32 %v1879_v20, %v1879_v20 }
 0x9a9   :  { %v1880_v23 = vmul.f32 %v1878_v21, %v1878_v21 }
 0x9aa   :  { %v1885_v25 = vsel %vm64_vm0, %v1881_v22, 0.0 }
 0x9ab   :  { %1886 = vadd.xlane.f32.xlu0 %v1885_v25  ;;  %v1882_v26 = vsel %vm64_vm0, %v1880_v23, 0.0 }
 0x9ac   :  { %1883 = vadd.xlane.f32.xlu1 %v1882_v26 }
 0x9ad   :  { %2326 = shalt.err (!%p2323_p4)
}
 0x9ae   :  { %s2327_s19 = scalar_lea.hbm %s2823_s15, 1024 }
 0x9af   :  { %p2328_p5 = scmp.ne.s32.totalorder %s2823_s15, %s2327_s19  ;;  %p2331_p6 = scmp.lt.u32.totalorder %s2327_s19, %s2823_s15 }
 0x9b1   :  { %p2333_p7 = pnand %p2331_p6, %p2328_p5 }
 0x9b3   :  { %2336 = shalt.err (!%p2333_p7)
}
 0x9b4   :  { %s2374_s23 = smov 128   ;;  %v1984_v33 = vld [vmem:[%s2820_s12] ss:$0 sm:$0xff] }
 0x9b5   :  { %1937 = dma.vmem_to_hbm [thread:$0]  %s1932_s5, 1024, %s2823_s15, [#allocation5], %s2374_s23, %s2374_s23, %s2370_s26  }
 0x9b6   :  { %v1985_v36 = vld [vmem:[%s2821_s13] ss:$0 sm:$0xff]  ;;  %s2375_s15 = smov [#allocation2]  }
 0x9b7   :  { %s1919_s6 = sshll.u32 %s2375_s15, 4  ;;  %s1920_s6 = int_to_ptr.vmem [resolvable:$true] %s1919_s6 }
 0x9b8   :  { %s2337_s2 = scalar_lea.vmem %s1920_s6, 256  ;;  %p2342_p9 = scmp.lt.s32.totalorder %s1920_s6, %s1920_s6 }
 0x9b9   :  { %p2338_p8 = scmp.ne.s32.totalorder %s1920_s6, %s2337_s2  ;;  %p2343_p10 = scmp.lt.s32.totalorder %s2337_s2, %s2337_s2 }
 0x9bb   :  { %p2344_p11 = por %p2343_p10, %p2342_p9 }
 0x9bd   :  { %p2345_p12 = pnand %p2344_p11, %p2338_p8 }
 0xa38   :  { %v1887_v24 = vpop.xlane.xlu0 %1886 }
 0xa39   :  { %v1889_v27 = vmul.f32 0.03125, %v1887_v24  ;;  %v1884_v28 = vpop.xlane.xlu1 %1883 }
 0xa3a   :  { %v1888_v29 = vmul.f32 0.03125, %v1884_v28 }
 0xa3b   :  { %v1891_v30 = vadd.f32 1e-12, %v1889_v27 }
 0xa3c   :  { %v1890_v31 = vadd.f32 1e-12, %v1888_v29 }
 0xa3d   :  { %2311 = vrsqrt.f32 %v1891_v30 }
 0xa3e   :  { %2313 = vrsqrt.f32 %v1890_v31 }
 0xa47   :  { %v2312_v32 = vpop.eup %2311 }
 0xa48   :  { %v2314_v34 = vpop.eup %2313  ;;  %v1895_v35 = vmul.f32 %v2312_v32, %v1879_v20 }
 0xa49   :  { %v1894_v37 = vmul.f32 %v2314_v34, %v1878_v21 }
 0xa4a   :  { %v1903_v38 = vmul.f32 %v1984_v33, %v1895_v35 }
 0xa4b   :  { %v1902_v39 = vmul.f32 %v1984_v33, %v1894_v37 }
 0xa4c   :  { %v1911_v40 = vadd.f32 %v1985_v36, %v1903_v38 }
 0xa4d   :  { %v1910_v41 = vadd.f32 %v1985_v36, %v1902_v39 }
 0xa4e   :  { %1913 = vst.msk [vmem:[#allocation2 + $0x8] sm:$0xff] %vm64_vm0, %v1911_v40 }
 0xa4f   :  { %1912 = vst.msk [vmem:[#allocation2] sm:$0xff] %vm64_vm0, %v1910_v41 }
 0xa50   :  { %2348 = shalt.err (!%p2345_p12)
}
 0xa51   :  { %s2349_s30 = scalar_lea.hbm %s2822_s14, 256 }
 0xa52   :  { %p2350_p13 = scmp.ne.s32.totalorder %s2822_s14, %s2349_s30  ;;  %p2353_p0 = scmp.lt.u32.totalorder %s2349_s30, %s2822_s14 }
 0xa54   :  { %p2355_p1 = pnand %p2353_p0, %p2350_p13 }
 0xa56   :  { %2358 = shalt.err (!%p2355_p1)
}
 0xa57   :  { %1925 = dma.vmem_to_hbm [thread:$0]  %s1920_s6, 256, %s2822_s14, [#allocation3], %s2374_s23, %s2374_s23, %s2370_s26  }
 0xa58   :  { %2359 = dma.done.wait [#allocation3], 256  }
 0xa59   :  { %2360 = vsyncadd [#allocation3], 4294967040 }
 0xa5a   :  { %2361 = dma.done.wait [#allocation5], 1024  }
 0xa5b   :  { %2362 = vsyncadd [#allocation5], 4294966272 }
 0xa5c   :  { %1944 = vsyncpa [#allocation3], 1 }
 0xa5d   :  { %1945 = vsyncpa [#allocation5], 1 }

</bundles_post_ra>
